<compile_context>
chip_gen: v7x
topology: tpu7x:2x2x1
jax: 0.10.0
libtpu: 0.0.40
codegen_flags: <defaults>
</compile_context>

<pallas_src>
import functools
import math

import jax
import jax.numpy as jnp
from jax import lax
from jax.experimental import pallas as pl
from jax.experimental.pallas import tpu as pltpu


# ---------------------------------------------------------------------------
# Fused Pallas kernel: all layers + pool + final linear, one graph-batch per grid point
# ---------------------------------------------------------------------------
def network_kernel(x_ref, adj_ref, pool_ref, params_ref, wfinal_ref, o_ref, *,
                   num_layers, num_heads, head_dim, hidden, fin_max):
    x = x_ref[...]                        # (N, Fin_max)  (layer-0 features zero-padded)
    adj = adj_ref[...]                    # (N, N); adj[i, j] = 1.0 iff edge j -> i exists

    # hoisted: additive mask (0 on edges, -1e30 elsewhere); shared by every head / layer
    adj_bias = (adj - 1.0) * 1e30

    # hoisted: per-head lane masks over the hidden axis (same for every layer)
    col = lax.broadcasted_iota(jnp.int32, (1, hidden), 1)
    head_masks = [
        jnp.logical_and(col >= h * head_dim, col < (h + 1) * head_dim)
        for h in range(num_heads)
    ]

    scale = 1.0 / math.sqrt(head_dim)
    for l in range(num_layers):                      # static unroll over layers
        p = params_ref[l]                            # (rows_pad, 4*hidden)
        w_all = p[0:fin_max, :]                      # (Fin_max, 4*hidden): [Wq|Wk|Wv|Wskip+Wres]
        b_all = p[fin_max:fin_max + 1, :]            # (1, 4*hidden)
        gamma = p[fin_max + 1:fin_max + 2, 0:hidden] # (1, hidden)
        beta = p[fin_max + 2:fin_max + 3, 0:hidden]  # (1, hidden)

        xin = x
        if xin.shape[1] < fin_max:                   # static branch; only if hidden < Fin_max
            xin = jnp.concatenate(
                [xin, jnp.zeros((xin.shape[0], fin_max - xin.shape[1]), xin.dtype)], axis=1)

        # single packed projection matmul (lane-dense: 4*hidden = 128 lanes)
        proj = jnp.dot(xin, w_all, preferred_element_type=jnp.float32) + b_all
        q = proj[:, 0:hidden]
        k = proj[:, hidden:2 * hidden]
        v = proj[:, 2 * hidden:3 * hidden]
        out = proj[:, 3 * hidden:4 * hidden]         # fused skip + residual projection

        attn_heads = []
        v_heads = []
        for h in range(num_heads):                   # static unroll over heads
            lo, hi = h * head_dim, (h + 1) * head_dim
            # q @ k^T without materializing a transpose of k
            scores = lax.dot_general(
                q[:, lo:hi], k[:, lo:hi], (((1,), (1,)), ((), ())),
                preferred_element_type=jnp.float32) * scale       # (N, N)
            masked = scores + adj_bias               # additive mask: edges keep score
            m = jnp.max(masked, axis=-1, keepdims=True)
            # exp of masked scores: non-edges underflow to 0 (no inf intermediates);
            # multiply by adj keeps zero-in-edge rows all-zero (torch_geometric behavior)
            e = jnp.exp(masked - m) * adj
            denom = jnp.sum(e, axis=-1, keepdims=True)
            inv = pl.reciprocal(jnp.maximum(denom, 1e-30), approx=True)   # EUP slot
            attn_heads.append(e * inv)
            # zero v outside this head's lanes so the fused matmul places each head's
            # contribution in its own lane range
            v_heads.append(jnp.where(head_masks[h], v, jnp.zeros_like(v)))

        # one MXU push per layer for all heads: (N, H*N) @ (H*N, hidden)
        a_cat = jnp.concatenate(attn_heads, axis=1)
        v_cat = jnp.concatenate(v_heads, axis=0)
        out = out + jnp.dot(a_cat, v_cat, preferred_element_type=jnp.float32)

        # LayerNorm (eps = 1e-5, PyTorch default) + ReLU
        mean = jnp.mean(out, axis=-1, keepdims=True)
        var = jnp.mean((out - mean) ** 2, axis=-1, keepdims=True)
        out = (out - mean) * lax.rsqrt(var + 1e-5)
        out = out * gamma + beta
        x = jnp.maximum(out, 0.0)                    # (N, hidden)

    # global_mean_pool + final Linear (no bias); lane-dense (128-wide padded) store
    pooled = jnp.dot(pool_ref[...], x, preferred_element_type=jnp.float32)   # (G, hidden)
    o_ref[...] = jnp.dot(pooled, wfinal_ref[...], preferred_element_type=jnp.float32)


# ---------------------------------------------------------------------------
# Wrapper
# ---------------------------------------------------------------------------
def _pack_params(layer_params, fin_max, hidden):
    """Pack every layer's params into one (L, rows_pad, 4*hidden) tensor.

    Per-layer rows: [0:fin_max] = [Wq|Wk|Wv|Wskip+Wres] (Fin zero-padded to fin_max),
    row fin_max = packed biases, row fin_max+1 = gamma (lanes 0:hidden),
    row fin_max+2 = beta (lanes 0:hidden); remaining rows zero (sublane padding).
    """
    rows = fin_max + 3
    rows_pad = ((rows + 7) // 8) * 8
    blocks = []
    for p in layer_params:
        w_all = jnp.concatenate(
            [p["wq"], p["wk"], p["wv"], p["wskip"] + p["wres"]], axis=1)       # (Fin, 4H)
        w_all = jnp.pad(w_all, ((0, fin_max - w_all.shape[0]), (0, 0)))
        b_all = jnp.concatenate(
            [p["bq"], p["bk"], p["bv"], p["bskip"] + p["bres"]], axis=1)       # (1, 4H)
        gamma = jnp.pad(p["gamma"], ((0, 0), (0, 3 * hidden)))
        beta = jnp.pad(p["beta"], ((0, 0), (0, 3 * hidden)))
        blk = jnp.concatenate([w_all, b_all, gamma, beta], axis=0)             # (rows, 4H)
        blk = jnp.pad(blk, ((0, rows_pad - rows), (0, 0)))
        blocks.append(blk)
    return jnp.stack(blocks, axis=0).astype(jnp.float32)


def transformer_conv_network(node_feats, adj, pool, layer_params, wfinal, num_heads):
    """node_feats: (B, N, Fin), adj: (B, N, N), pool: (B, G, N)."""
    B, N, fin = node_feats.shape
    num_layers = len(layer_params)
    hidden = layer_params[-1]["wq"].shape[1]
    head_dim = hidden // num_heads
    G = pool.shape[1]
    out_size = wfinal.shape[1]
    fin_max = max(fin, hidden)
    OUT_PAD = 128                                    # lane-dense output store

    x = node_feats.astype(jnp.float32)
    if fin < fin_max:
        x = jnp.pad(x, ((0, 0), (0, 0), (0, fin_max - fin)))
    params = _pack_params(layer_params, fin_max, hidden)
    wfinal_pad = jnp.pad(wfinal.astype(jnp.float32), ((0, 0), (0, OUT_PAD - out_size)))

    kernel = functools.partial(
        network_kernel, num_layers=num_layers, num_heads=num_heads,
        head_dim=head_dim, hidden=hidden, fin_max=fin_max)

    out = pl.pallas_call(
        kernel,
        out_shape=jax.ShapeDtypeStruct((B, G, OUT_PAD), jnp.float32),
        grid=(B,),
        in_specs=[
            pl.BlockSpec((None, N, fin_max), lambda b: (b, 0, 0)),   # node features
            pl.BlockSpec((None, N, N), lambda b: (b, 0, 0)),         # adjacency mask
            pl.BlockSpec((None, G, N), lambda b: (b, 0, 0)),         # mean-pool matrix
            pl.BlockSpec(params.shape, lambda b: (0, 0, 0)),         # packed layer params (held)
            pl.BlockSpec(wfinal_pad.shape, lambda b: (0, 0)),        # final linear (held)
        ],
        out_specs=pl.BlockSpec((None, G, OUT_PAD), lambda b: (b, 0, 0)),
        compiler_params=pltpu.CompilerParams(dimension_semantics=("parallel",)),
    )(x, adj.astype(jnp.float32), pool.astype(jnp.float32), params, wfinal_pad)
    return out[:, :, :out_size]


# ---------------------------------------------------------------------------
# Pure-JAX reference (same math) for a sanity check
# ---------------------------------------------------------------------------
def ref_network(node_feats, adj, pool, layer_params, wfinal, num_heads):
    def one(x, a, pm):
        x = x.astype(jnp.float32)
        for p in layer_params:
            hidden = p["wq"].shape[1]
            head_dim = hidden // num_heads
            q = x @ p["wq"] + p["bq"]
            k = x @ p["wk"] + p["bk"]
            v = x @ p["wv"] + p["bv"]
            heads = []
            for h in range(num_heads):
                lo, hi = h * head_dim, (h + 1) * head_dim
                scores = (q[:, lo:hi] @ k[:, lo:hi].T) / math.sqrt(head_dim)
                masked = jnp.where(a > 0, scores, -1e30)
                m = jnp.max(masked, axis=-1, keepdims=True)
                e = jnp.where(a > 0, jnp.exp(scores - m), 0.0)
                attn = e / jnp.maximum(e.sum(-1, keepdims=True), 1e-30)
                heads.append(attn @ v[:, lo:hi])
            out = jnp.concatenate(heads, axis=-1)
            out = out + x @ p["wskip"] + p["bskip"]
            out = out + x @ p["wres"] + p["bres"]
            mean = jnp.mean(out, axis=-1, keepdims=True)
            var = jnp.mean((out - mean) ** 2, axis=-1, keepdims=True)
            out = (out - mean) / jnp.sqrt(var + 1e-5) * p["gamma"] + p["beta"]
            x = jnp.maximum(out, 0.0)
        return (pm @ x) @ wfinal
    return jnp.stack([one(node_feats[b], adj[b], pool[b])
                      for b in range(node_feats.shape[0])])


# ---------------------------------------------------------------------------
# Main
# ---------------------------------------------------------------------------
if __name__ == "__main__":
    # Model config (type == 1, dropout == 0.0 / eval mode)
    INPUT_SIZE, HIDDEN_SIZE, OUTPUT_SIZE = 8, 32, 4
    NUM_LAYERS, NUM_HEADS = 2, 2
    NODES_PER_GRAPH, NUM_GRAPHS = 8, 2
    N = NODES_PER_GRAPH * NUM_GRAPHS        # 16 nodes per graph-batch
    B = 8                                   # graph-batches -> parallel grid axis

    key = jax.random.PRNGKey(0)

    # --- deterministic graph data -------------------------------------------------
    key, kx = jax.random.split(key)
    node_feats = jax.random.normal(kx, (B, N, INPUT_SIZE), dtype=jnp.float32)

    src0 = jnp.arange(NODES_PER_GRAPH, dtype=jnp.int32)
    dst0 = (src0 + 1) % NODES_PER_GRAPH
    src = jnp.concatenate([src0, dst0, src0 + NODES_PER_GRAPH, dst0 + NODES_PER_GRAPH])
    dst = jnp.concatenate([dst0, src0, dst0 + NODES_PER_GRAPH, src0 + NODES_PER_GRAPH])
    edge_index = jnp.stack([src, dst])      # (2, E), row0=source j, row1=target i

    batch_vec = jnp.concatenate(
        [jnp.full((NODES_PER_GRAPH,), g, dtype=jnp.int32) for g in range(NUM_GRAPHS)]
    )

    # dense adjacency mask: adj[target, source]; same structure in every graph-batch
    adj1 = jnp.zeros((N, N), jnp.float32).at[edge_index[1], edge_index[0]].set(1.0)
    counts = jax.ops.segment_sum(jnp.ones((N,), jnp.float32), batch_vec, NUM_GRAPHS)
    pool1 = jnp.where(
        batch_vec[None, :] == jnp.arange(NUM_GRAPHS)[:, None], 1.0 / counts[:, None], 0.0
    ).astype(jnp.float32)
    adj = jnp.tile(adj1[None], (B, 1, 1))
    pool = jnp.tile(pool1[None], (B, 1, 1))

    # --- deterministic parameter init --------------------------------------------
    def make_layer_params(key, fin, hidden):
        keys = jax.random.split(key, 10)
        def lin(kw, kb):
            w = 0.1 * jax.random.normal(kw, (fin, hidden), dtype=jnp.float32)
            b = 0.1 * jax.random.normal(kb, (1, hidden), dtype=jnp.float32)
            return w, b
        wq, bq = lin(keys[0], keys[1])
        wk, bk = lin(keys[2], keys[3])
        wv, bv = lin(keys[4], keys[5])
        wskip, bskip = lin(keys[6], keys[7])
        wres, bres = lin(keys[8], keys[9])
        return dict(
            wq=wq, bq=bq, wk=wk, bk=bk, wv=wv, bv=bv,
            wskip=wskip, bskip=bskip, wres=wres, bres=bres,
            gamma=jnp.ones((1, hidden), jnp.float32),   # LayerNorm defaults
            beta=jnp.zeros((1, hidden), jnp.float32),
        )

    layer_params = []
    fin = INPUT_SIZE
    for _ in range(NUM_LAYERS):
        key, kl = jax.random.split(key)
        layer_params.append(make_layer_params(kl, fin, HIDDEN_SIZE))
        fin = HIDDEN_SIZE

    key, kf = jax.random.split(key)
    wfinal = 0.1 * jax.random.normal(kf, (HIDDEN_SIZE, OUTPUT_SIZE), dtype=jnp.float32)

    # --- run ----------------------------------------------------------------------
    out = transformer_conv_network(node_feats, adj, pool, layer_params, wfinal, NUM_HEADS)
    out = jax.block_until_ready(out)

    ref = ref_network(node_feats, adj, pool, layer_params, wfinal, NUM_HEADS)
    assert out.shape == (B, NUM_GRAPHS, OUTPUT_SIZE)
    # tolerance accommodates the EUP approximate reciprocal in the softmax denominator
    assert jnp.allclose(out, ref, atol=5e-3, rtol=5e-3), (out, ref)

    print("KERNEL_OK")
</pallas_src>

<mosaic_0001>
module attributes {stable_mosaic.version = 11 : i64} {
  func.func @network_kernel(%arg0: i32, %arg1: memref<1x16x32xf32, #tpu.memory_space<vmem>>, %arg2: memref<1x16x16xf32, #tpu.memory_space<vmem>>, %arg3: memref<1x2x16xf32, #tpu.memory_space<vmem>>, %arg4: memref<2x40x128xf32, #tpu.memory_space<vmem>>, %arg5: memref<32x128xf32, #tpu.memory_space<vmem>>, %arg6: memref<1x2x128xf32, #tpu.memory_space<vmem>>) attributes {dimension_semantics = [#tpu.dimension_semantics<parallel>], iteration_bounds = array<i64: 8>, scalar_prefetch = 0 : i64, scratch_operands = 0 : i64, tpu.core_type = #tpu.core_type<tc>, window_params = [{transform_indices = @transform_0, window_bounds = array<i64: 1, 16, 32>}, {transform_indices = @transform_1, window_bounds = array<i64: 1, 16, 16>}, {transform_indices = @transform_2, window_bounds = array<i64: 1, 2, 16>}, {pipeline_mode = #tpu.pipeline_mode<synchronous>, transform_indices = @transform_3, window_bounds = array<i64: 2, 40, 128>}, {pipeline_mode = #tpu.pipeline_mode<synchronous>, transform_indices = @transform_4, window_bounds = array<i64: 32, 128>}, {transform_indices = @transform_5, window_bounds = array<i64: 1, 2, 128>}]} {
    %c0 = arith.constant 0 : index
    %c0_0 = arith.constant 0 : index
    %c0_1 = arith.constant 0 : index
    %0 = vector.load %arg1[%c0, %c0_0, %c0_1] : memref<1x16x32xf32, #tpu.memory_space<vmem>>, vector<1x16x32xf32>
    %1 = vector.shape_cast %0 : vector<1x16x32xf32> to vector<16x32xf32>
    %c0_2 = arith.constant 0 : index
    %c0_3 = arith.constant 0 : index
    %c0_4 = arith.constant 0 : index
    %2 = vector.load %arg2[%c0_2, %c0_3, %c0_4] : memref<1x16x16xf32, #tpu.memory_space<vmem>>, vector<1x16x16xf32>
    %3 = vector.shape_cast %2 : vector<1x16x16xf32> to vector<16x16xf32>
    %cst = arith.constant 1.000000e+00 : f32
    %4 = vector.broadcast %cst : f32 to vector<16x16xf32>
    %5 = arith.subf %3, %4 : vector<16x16xf32>
    %cst_5 = arith.constant 1.000000e+30 : f32
    %6 = vector.broadcast %cst_5 : f32 to vector<16x16xf32>
    %7 = arith.mulf %5, %6 : vector<16x16xf32>
    %8 = tpu.iota {dimensions = array<i32: 1>} : vector<1x32xi32>
    %c0_i32 = arith.constant 0 : i32
    %9 = vector.broadcast %c0_i32 : i32 to vector<1x32xi32>
    %10 = arith.cmpi sge, %8, %9 : vector<1x32xi32>
    %c16_i32 = arith.constant 16 : i32
    %11 = vector.broadcast %c16_i32 : i32 to vector<1x32xi32>
    %12 = arith.cmpi slt, %8, %11 : vector<1x32xi32>
    %13 = arith.andi %10, %12 : vector<1x32xi1>
    %c16_i32_6 = arith.constant 16 : i32
    %14 = vector.broadcast %c16_i32_6 : i32 to vector<1x32xi32>
    %15 = arith.cmpi sge, %8, %14 : vector<1x32xi32>
    %c32_i32 = arith.constant 32 : i32
    %16 = vector.broadcast %c32_i32 : i32 to vector<1x32xi32>
    %17 = arith.cmpi slt, %8, %16 : vector<1x32xi32>
    %18 = arith.andi %15, %17 : vector<1x32xi1>
    %c0_7 = arith.constant 0 : index
    %c0_8 = arith.constant 0 : index
    %c0_9 = arith.constant 0 : index
    %19 = vector.load %arg4[%c0_7, %c0_8, %c0_9] : memref<2x40x128xf32, #tpu.memory_space<vmem>>, vector<1x40x128xf32>
    %20 = vector.shape_cast %19 : vector<1x40x128xf32> to vector<40x128xf32>
    %21 = vector.extract_strided_slice %20 {offsets = [0, 0], sizes = [32, 128], strides = [1, 1]} : vector<40x128xf32> to vector<32x128xf32>
    %22 = vector.extract_strided_slice %20 {offsets = [32, 0], sizes = [1, 128], strides = [1, 1]} : vector<40x128xf32> to vector<1x128xf32>
    %23 = vector.extract_strided_slice %20 {offsets = [33, 0], sizes = [1, 32], strides = [1, 1]} : vector<40x128xf32> to vector<1x32xf32>
    %24 = vector.extract_strided_slice %20 {offsets = [34, 0], sizes = [1, 32], strides = [1, 1]} : vector<40x128xf32> to vector<1x32xf32>
    %cst_10 = arith.constant dense<0.000000e+00> : vector<16x128xf32>
    %25 = tpu.matmul %1, %21, %cst_10 {dimension_numbers = #tpu.dot_dimension_numbers<[1], [0], [0], [1], [0, 0, 1, 1], [], []>} : vector<16x32xf32>, vector<32x128xf32>, vector<16x128xf32> -> vector<16x128xf32>
    %26 = vector.broadcast %22 : vector<1x128xf32> to vector<16x128xf32>
    %27 = arith.addf %25, %26 : vector<16x128xf32>
    %28 = vector.extract_strided_slice %27 {offsets = [0, 0], sizes = [16, 32], strides = [1, 1]} : vector<16x128xf32> to vector<16x32xf32>
    %29 = vector.extract_strided_slice %27 {offsets = [0, 32], sizes = [16, 32], strides = [1, 1]} : vector<16x128xf32> to vector<16x32xf32>
    %30 = vector.extract_strided_slice %27 {offsets = [0, 64], sizes = [16, 32], strides = [1, 1]} : vector<16x128xf32> to vector<16x32xf32>
    %31 = vector.extract_strided_slice %27 {offsets = [0, 96], sizes = [16, 32], strides = [1, 1]} : vector<16x128xf32> to vector<16x32xf32>
    %32 = vector.extract_strided_slice %28 {offsets = [0, 0], sizes = [16, 16], strides = [1, 1]} : vector<16x32xf32> to vector<16x16xf32>
    %33 = vector.extract_strided_slice %29 {offsets = [0, 0], sizes = [16, 16], strides = [1, 1]} : vector<16x32xf32> to vector<16x16xf32>
    %cst_11 = arith.constant dense<0.000000e+00> : vector<16x16xf32>
    %34 = tpu.matmul %32, %33, %cst_11 {dimension_numbers = #tpu.dot_dimension_numbers<[1], [1], [0], [0], [0, 0, 1, 0], [], []>} : vector<16x16xf32>, vector<16x16xf32>, vector<16x16xf32> -> vector<16x16xf32>
    %cst_12 = arith.constant 2.500000e-01 : f32
    %35 = vector.broadcast %cst_12 : f32 to vector<16x16xf32>
    %36 = arith.mulf %34, %35 : vector<16x16xf32>
    %37 = arith.addf %36, %7 : vector<16x16xf32>
    %cst_13 = arith.constant dense<0xFF800000> : vector<16xf32>
    %38 = vector.multi_reduction <maximumf>, %37, %cst_13 [1] : vector<16x16xf32> to vector<16xf32>
    %39 = vector.shape_cast %38 : vector<16xf32> to vector<16x1xf32>
    %40 = vector.broadcast %39 : vector<16x1xf32> to vector<16x16xf32>
    %41 = arith.subf %37, %40 : vector<16x16xf32>
    %42 = math.exp %41 : vector<16x16xf32>
    %43 = arith.mulf %42, %3 : vector<16x16xf32>
    %cst_14 = arith.constant dense<0.000000e+00> : vector<16xf32>
    %44 = vector.multi_reduction <add>, %43, %cst_14 [1] : vector<16x16xf32> to vector<16xf32>
    %45 = vector.shape_cast %44 : vector<16xf32> to vector<16x1xf32>
    %cst_15 = arith.constant 1.000000e-30 : f32
    %46 = vector.broadcast %cst_15 : f32 to vector<16x1xf32>
    %47 = arith.maximumf %45, %46 : vector<16x1xf32>
    %48 = tpu.reciprocal %47 {approx = true} : vector<16x1xf32> -> vector<16x1xf32>
    %49 = vector.broadcast %48 : vector<16x1xf32> to vector<16x16xf32>
    %50 = arith.mulf %43, %49 : vector<16x16xf32>
    %cst_16 = arith.constant 0.000000e+00 : f32
    %51 = vector.broadcast %cst_16 : f32 to vector<16x32xf32>
    %52 = vector.shape_cast %13 : vector<1x32xi1> to vector<1x32xi1>
    %53 = vector.broadcast %52 : vector<1x32xi1> to vector<16x32xi1>
    %54 = arith.select %53, %30, %51 : vector<16x32xi1>, vector<16x32xf32>
    %55 = vector.extract_strided_slice %28 {offsets = [0, 16], sizes = [16, 16], strides = [1, 1]} : vector<16x32xf32> to vector<16x16xf32>
    %56 = vector.extract_strided_slice %29 {offsets = [0, 16], sizes = [16, 16], strides = [1, 1]} : vector<16x32xf32> to vector<16x16xf32>
    %cst_17 = arith.constant dense<0.000000e+00> : vector<16x16xf32>
    %57 = tpu.matmul %55, %56, %cst_17 {dimension_numbers = #tpu.dot_dimension_numbers<[1], [1], [0], [0], [0, 0, 1, 0], [], []>} : vector<16x16xf32>, vector<16x16xf32>, vector<16x16xf32> -> vector<16x16xf32>
    %cst_18 = arith.constant 2.500000e-01 : f32
    %58 = vector.broadcast %cst_18 : f32 to vector<16x16xf32>
    %59 = arith.mulf %57, %58 : vector<16x16xf32>
    %60 = arith.addf %59, %7 : vector<16x16xf32>
    %cst_19 = arith.constant dense<0xFF800000> : vector<16xf32>
    %61 = vector.multi_reduction <maximumf>, %60, %cst_19 [1] : vector<16x16xf32> to vector<16xf32>
    %62 = vector.shape_cast %61 : vector<16xf32> to vector<16x1xf32>
    %63 = vector.broadcast %62 : vector<16x1xf32> to vector<16x16xf32>
    %64 = arith.subf %60, %63 : vector<16x16xf32>
    %65 = math.exp %64 : vector<16x16xf32>
    %66 = arith.mulf %65, %3 : vector<16x16xf32>
    %cst_20 = arith.constant dense<0.000000e+00> : vector<16xf32>
    %67 = vector.multi_reduction <add>, %66, %cst_20 [1] : vector<16x16xf32> to vector<16xf32>
    %68 = vector.shape_cast %67 : vector<16xf32> to vector<16x1xf32>
    %cst_21 = arith.constant 1.000000e-30 : f32
    %69 = vector.broadcast %cst_21 : f32 to vector<16x1xf32>
    %70 = arith.maximumf %68, %69 : vector<16x1xf32>
    %71 = tpu.reciprocal %70 {approx = true} : vector<16x1xf32> -> vector<16x1xf32>
    %72 = vector.broadcast %71 : vector<16x1xf32> to vector<16x16xf32>
    %73 = arith.mulf %66, %72 : vector<16x16xf32>
    %cst_22 = arith.constant 0.000000e+00 : f32
    %74 = vector.broadcast %cst_22 : f32 to vector<16x32xf32>
    %75 = vector.shape_cast %18 : vector<1x32xi1> to vector<1x32xi1>
    %76 = vector.broadcast %75 : vector<1x32xi1> to vector<16x32xi1>
    %77 = arith.select %76, %30, %74 : vector<16x32xi1>, vector<16x32xf32>
    %78 = tpu.concatenate %50, %73 in 1 : vector<16x16xf32>, vector<16x16xf32> -> vector<16x32xf32>
    %79 = tpu.concatenate %54, %77 in 0 : vector<16x32xf32>, vector<16x32xf32> -> vector<32x32xf32>
    %cst_23 = arith.constant dense<0.000000e+00> : vector<16x32xf32>
    %80 = tpu.matmul %78, %79, %cst_23 {dimension_numbers = #tpu.dot_dimension_numbers<[1], [0], [0], [1], [0, 0, 1, 1], [], []>} : vector<16x32xf32>, vector<32x32xf32>, vector<16x32xf32> -> vector<16x32xf32>
    %81 = arith.addf %31, %80 : vector<16x32xf32>
    %cst_24 = arith.constant dense<0.000000e+00> : vector<16xf32>
    %82 = vector.multi_reduction <add>, %81, %cst_24 [1] : vector<16x32xf32> to vector<16xf32>
    %83 = vector.shape_cast %82 : vector<16xf32> to vector<16x1xf32>
    %cst_25 = arith.constant 3.200000e+01 : f32
    %84 = vector.broadcast %cst_25 : f32 to vector<16x1xf32>
    %85 = arith.divf %83, %84 : vector<16x1xf32>
    %86 = vector.broadcast %85 : vector<16x1xf32> to vector<16x32xf32>
    %87 = arith.subf %81, %86 : vector<16x32xf32>
    %88 = arith.mulf %87, %87 : vector<16x32xf32>
    %cst_26 = arith.constant dense<0.000000e+00> : vector<16xf32>
    %89 = vector.multi_reduction <add>, %88, %cst_26 [1] : vector<16x32xf32> to vector<16xf32>
    %90 = vector.shape_cast %89 : vector<16xf32> to vector<16x1xf32>
    %cst_27 = arith.constant 3.200000e+01 : f32
    %91 = vector.broadcast %cst_27 : f32 to vector<16x1xf32>
    %92 = arith.divf %90, %91 : vector<16x1xf32>
    %93 = vector.broadcast %85 : vector<16x1xf32> to vector<16x32xf32>
    %94 = arith.subf %81, %93 : vector<16x32xf32>
    %cst_28 = arith.constant 9.99999974E-6 : f32
    %95 = vector.broadcast %cst_28 : f32 to vector<16x1xf32>
    %96 = arith.addf %92, %95 : vector<16x1xf32>
    %97 = math.rsqrt %96 : vector<16x1xf32>
    %98 = vector.broadcast %97 : vector<16x1xf32> to vector<16x32xf32>
    %99 = arith.mulf %94, %98 : vector<16x32xf32>
    %100 = vector.broadcast %23 : vector<1x32xf32> to vector<16x32xf32>
    %101 = arith.mulf %99, %100 : vector<16x32xf32>
    %102 = vector.broadcast %24 : vector<1x32xf32> to vector<16x32xf32>
    %103 = arith.addf %101, %102 : vector<16x32xf32>
    %cst_29 = arith.constant 0.000000e+00 : f32
    %104 = vector.broadcast %cst_29 : f32 to vector<16x32xf32>
    %105 = arith.maximumf %103, %104 : vector<16x32xf32>
    %c1 = arith.constant 1 : index
    %c0_30 = arith.constant 0 : index
    %c0_31 = arith.constant 0 : index
    %106 = vector.load %arg4[%c1, %c0_30, %c0_31] : memref<2x40x128xf32, #tpu.memory_space<vmem>>, vector<1x40x128xf32>
    %107 = vector.shape_cast %106 : vector<1x40x128xf32> to vector<40x128xf32>
    %108 = vector.extract_strided_slice %107 {offsets = [0, 0], sizes = [32, 128], strides = [1, 1]} : vector<40x128xf32> to vector<32x128xf32>
    %109 = vector.extract_strided_slice %107 {offsets = [32, 0], sizes = [1, 128], strides = [1, 1]} : vector<40x128xf32> to vector<1x128xf32>
    %110 = vector.extract_strided_slice %107 {offsets = [33, 0], sizes = [1, 32], strides = [1, 1]} : vector<40x128xf32> to vector<1x32xf32>
    %111 = vector.extract_strided_slice %107 {offsets = [34, 0], sizes = [1, 32], strides = [1, 1]} : vector<40x128xf32> to vector<1x32xf32>
    %cst_32 = arith.constant dense<0.000000e+00> : vector<16x128xf32>
    %112 = tpu.matmul %105, %108, %cst_32 {dimension_numbers = #tpu.dot_dimension_numbers<[1], [0], [0], [1], [0, 0, 1, 1], [], []>} : vector<16x32xf32>, vector<32x128xf32>, vector<16x128xf32> -> vector<16x128xf32>
    %113 = vector.broadcast %109 : vector<1x128xf32> to vector<16x128xf32>
    %114 = arith.addf %112, %113 : vector<16x128xf32>
    %115 = vector.extract_strided_slice %114 {offsets = [0, 0], sizes = [16, 32], strides = [1, 1]} : vector<16x128xf32> to vector<16x32xf32>
    %116 = vector.extract_strided_slice %114 {offsets = [0, 32], sizes = [16, 32], strides = [1, 1]} : vector<16x128xf32> to vector<16x32xf32>
    %117 = vector.extract_strided_slice %114 {offsets = [0, 64], sizes = [16, 32], strides = [1, 1]} : vector<16x128xf32> to vector<16x32xf32>
    %118 = vector.extract_strided_slice %114 {offsets = [0, 96], sizes = [16, 32], strides = [1, 1]} : vector<16x128xf32> to vector<16x32xf32>
    %119 = vector.extract_strided_slice %115 {offsets = [0, 0], sizes = [16, 16], strides = [1, 1]} : vector<16x32xf32> to vector<16x16xf32>
    %120 = vector.extract_strided_slice %116 {offsets = [0, 0], sizes = [16, 16], strides = [1, 1]} : vector<16x32xf32> to vector<16x16xf32>
    %cst_33 = arith.constant dense<0.000000e+00> : vector<16x16xf32>
    %121 = tpu.matmul %119, %120, %cst_33 {dimension_numbers = #tpu.dot_dimension_numbers<[1], [1], [0], [0], [0, 0, 1, 0], [], []>} : vector<16x16xf32>, vector<16x16xf32>, vector<16x16xf32> -> vector<16x16xf32>
    %cst_34 = arith.constant 2.500000e-01 : f32
    %122 = vector.broadcast %cst_34 : f32 to vector<16x16xf32>
    %123 = arith.mulf %121, %122 : vector<16x16xf32>
    %124 = arith.addf %123, %7 : vector<16x16xf32>
    %cst_35 = arith.constant dense<0xFF800000> : vector<16xf32>
    %125 = vector.multi_reduction <maximumf>, %124, %cst_35 [1] : vector<16x16xf32> to vector<16xf32>
    %126 = vector.shape_cast %125 : vector<16xf32> to vector<16x1xf32>
    %127 = vector.broadcast %126 : vector<16x1xf32> to vector<16x16xf32>
    %128 = arith.subf %124, %127 : vector<16x16xf32>
    %129 = math.exp %128 : vector<16x16xf32>
    %130 = arith.mulf %129, %3 : vector<16x16xf32>
    %cst_36 = arith.constant dense<0.000000e+00> : vector<16xf32>
    %131 = vector.multi_reduction <add>, %130, %cst_36 [1] : vector<16x16xf32> to vector<16xf32>
    %132 = vector.shape_cast %131 : vector<16xf32> to vector<16x1xf32>
    %cst_37 = arith.constant 1.000000e-30 : f32
    %133 = vector.broadcast %cst_37 : f32 to vector<16x1xf32>
    %134 = arith.maximumf %132, %133 : vector<16x1xf32>
    %135 = tpu.reciprocal %134 {approx = true} : vector<16x1xf32> -> vector<16x1xf32>
    %136 = vector.broadcast %135 : vector<16x1xf32> to vector<16x16xf32>
    %137 = arith.mulf %130, %136 : vector<16x16xf32>
    %cst_38 = arith.constant 0.000000e+00 : f32
    %138 = vector.broadcast %cst_38 : f32 to vector<16x32xf32>
    %139 = vector.shape_cast %13 : vector<1x32xi1> to vector<1x32xi1>
    %140 = vector.broadcast %139 : vector<1x32xi1> to vector<16x32xi1>
    %141 = arith.select %140, %117, %138 : vector<16x32xi1>, vector<16x32xf32>
    %142 = vector.extract_strided_slice %115 {offsets = [0, 16], sizes = [16, 16], strides = [1, 1]} : vector<16x32xf32> to vector<16x16xf32>
    %143 = vector.extract_strided_slice %116 {offsets = [0, 16], sizes = [16, 16], strides = [1, 1]} : vector<16x32xf32> to vector<16x16xf32>
    %cst_39 = arith.constant dense<0.000000e+00> : vector<16x16xf32>
    %144 = tpu.matmul %142, %143, %cst_39 {dimension_numbers = #tpu.dot_dimension_numbers<[1], [1], [0], [0], [0, 0, 1, 0], [], []>} : vector<16x16xf32>, vector<16x16xf32>, vector<16x16xf32> -> vector<16x16xf32>
    %cst_40 = arith.constant 2.500000e-01 : f32
    %145 = vector.broadcast %cst_40 : f32 to vector<16x16xf32>
    %146 = arith.mulf %144, %145 : vector<16x16xf32>
    %147 = arith.addf %146, %7 : vector<16x16xf32>
    %cst_41 = arith.constant dense<0xFF800000> : vector<16xf32>
    %148 = vector.multi_reduction <maximumf>, %147, %cst_41 [1] : vector<16x16xf32> to vector<16xf32>
    %149 = vector.shape_cast %148 : vector<16xf32> to vector<16x1xf32>
    %150 = vector.broadcast %149 : vector<16x1xf32> to vector<16x16xf32>
    %151 = arith.subf %147, %150 : vector<16x16xf32>
    %152 = math.exp %151 : vector<16x16xf32>
    %153 = arith.mulf %152, %3 : vector<16x16xf32>
    %cst_42 = arith.constant dense<0.000000e+00> : vector<16xf32>
    %154 = vector.multi_reduction <add>, %153, %cst_42 [1] : vector<16x16xf32> to vector<16xf32>
    %155 = vector.shape_cast %154 : vector<16xf32> to vector<16x1xf32>
    %cst_43 = arith.constant 1.000000e-30 : f32
    %156 = vector.broadcast %cst_43 : f32 to vector<16x1xf32>
    %157 = arith.maximumf %155, %156 : vector<16x1xf32>
    %158 = tpu.reciprocal %157 {approx = true} : vector<16x1xf32> -> vector<16x1xf32>
    %159 = vector.broadcast %158 : vector<16x1xf32> to vector<16x16xf32>
    %160 = arith.mulf %153, %159 : vector<16x16xf32>
    %cst_44 = arith.constant 0.000000e+00 : f32
    %161 = vector.broadcast %cst_44 : f32 to vector<16x32xf32>
    %162 = vector.shape_cast %18 : vector<1x32xi1> to vector<1x32xi1>
    %163 = vector.broadcast %162 : vector<1x32xi1> to vector<16x32xi1>
    %164 = arith.select %163, %117, %161 : vector<16x32xi1>, vector<16x32xf32>
    %165 = tpu.concatenate %137, %160 in 1 : vector<16x16xf32>, vector<16x16xf32> -> vector<16x32xf32>
    %166 = tpu.concatenate %141, %164 in 0 : vector<16x32xf32>, vector<16x32xf32> -> vector<32x32xf32>
    %cst_45 = arith.constant dense<0.000000e+00> : vector<16x32xf32>
    %167 = tpu.matmul %165, %166, %cst_45 {dimension_numbers = #tpu.dot_dimension_numbers<[1], [0], [0], [1], [0, 0, 1, 1], [], []>} : vector<16x32xf32>, vector<32x32xf32>, vector<16x32xf32> -> vector<16x32xf32>
    %168 = arith.addf %118, %167 : vector<16x32xf32>
    %cst_46 = arith.constant dense<0.000000e+00> : vector<16xf32>
    %169 = vector.multi_reduction <add>, %168, %cst_46 [1] : vector<16x32xf32> to vector<16xf32>
    %170 = vector.shape_cast %169 : vector<16xf32> to vector<16x1xf32>
    %cst_47 = arith.constant 3.200000e+01 : f32
    %171 = vector.broadcast %cst_47 : f32 to vector<16x1xf32>
    %172 = arith.divf %170, %171 : vector<16x1xf32>
    %173 = vector.broadcast %172 : vector<16x1xf32> to vector<16x32xf32>
    %174 = arith.subf %168, %173 : vector<16x32xf32>
    %175 = arith.mulf %174, %174 : vector<16x32xf32>
    %cst_48 = arith.constant dense<0.000000e+00> : vector<16xf32>
    %176 = vector.multi_reduction <add>, %175, %cst_48 [1] : vector<16x32xf32> to vector<16xf32>
    %177 = vector.shape_cast %176 : vector<16xf32> to vector<16x1xf32>
    %cst_49 = arith.constant 3.200000e+01 : f32
    %178 = vector.broadcast %cst_49 : f32 to vector<16x1xf32>
    %179 = arith.divf %177, %178 : vector<16x1xf32>
    %180 = vector.broadcast %172 : vector<16x1xf32> to vector<16x32xf32>
    %181 = arith.subf %168, %180 : vector<16x32xf32>
    %cst_50 = arith.constant 9.99999974E-6 : f32
    %182 = vector.broadcast %cst_50 : f32 to vector<16x1xf32>
    %183 = arith.addf %179, %182 : vector<16x1xf32>
    %184 = math.rsqrt %183 : vector<16x1xf32>
    %185 = vector.broadcast %184 : vector<16x1xf32> to vector<16x32xf32>
    %186 = arith.mulf %181, %185 : vector<16x32xf32>
    %187 = vector.broadcast %110 : vector<1x32xf32> to vector<16x32xf32>
    %188 = arith.mulf %186, %187 : vector<16x32xf32>
    %189 = vector.broadcast %111 : vector<1x32xf32> to vector<16x32xf32>
    %190 = arith.addf %188, %189 : vector<16x32xf32>
    %cst_51 = arith.constant 0.000000e+00 : f32
    %191 = vector.broadcast %cst_51 : f32 to vector<16x32xf32>
    %192 = arith.maximumf %190, %191 : vector<16x32xf32>
    %c0_52 = arith.constant 0 : index
    %c0_53 = arith.constant 0 : index
    %c0_54 = arith.constant 0 : index
    %193 = vector.load %arg3[%c0_52, %c0_53, %c0_54] : memref<1x2x16xf32, #tpu.memory_space<vmem>>, vector<1x2x16xf32>
    %194 = vector.shape_cast %193 : vector<1x2x16xf32> to vector<2x16xf32>
    %cst_55 = arith.constant dense<0.000000e+00> : vector<2x32xf32>
    %195 = tpu.matmul %194, %192, %cst_55 {dimension_numbers = #tpu.dot_dimension_numbers<[1], [0], [0], [1], [0, 0, 1, 1], [], []>} : vector<2x16xf32>, vector<16x32xf32>, vector<2x32xf32> -> vector<2x32xf32>
    %c0_56 = arith.constant 0 : index
    %c0_57 = arith.constant 0 : index
    %196 = vector.load %arg5[%c0_56, %c0_57] : memref<32x128xf32, #tpu.memory_space<vmem>>, vector<32x128xf32>
    %cst_58 = arith.constant dense<0.000000e+00> : vector<2x128xf32>
    %197 = tpu.matmul %195, %196, %cst_58 {dimension_numbers = #tpu.dot_dimension_numbers<[1], [0], [0], [1], [0, 0, 1, 1], [], []>} : vector<2x32xf32>, vector<32x128xf32>, vector<2x128xf32> -> vector<2x128xf32>
    %c0_59 = arith.constant 0 : index
    %c0_60 = arith.constant 0 : index
    %c0_61 = arith.constant 0 : index
    %198 = vector.load %arg6[%c0_59, %c0_60, %c0_61] : memref<1x2x128xf32, #tpu.memory_space<vmem>>, vector<1x2x128xf32>
    %199 = vector.shape_cast %198 : vector<1x2x128xf32> to vector<2x128xf32>
    %200 = vector.shape_cast %197 : vector<2x128xf32> to vector<1x2x128xf32>
    tpu.vector_store %arg6[%c0_59, %c0_60, %c0_61], %200 {strides = array<i32>} : memref<1x2x128xf32, #tpu.memory_space<vmem>>, vector<1x2x128xf32>,
    return
  }
  func.func @transform_0(%arg0: i32) -> (i32, i32, i32) {
    %c0_i32 = arith.constant 0 : i32
    %c0_i32_0 = arith.constant 0 : i32
    %c0_i32_1 = arith.constant 0 : i32
    return %arg0, %c0_i32, %c0_i32_0 : i32, i32, i32
  }
  func.func @transform_1(%arg0: i32) -> (i32, i32, i32) {
    %c0_i32 = arith.constant 0 : i32
    %c0_i32_0 = arith.constant 0 : i32
    %c0_i32_1 = arith.constant 0 : i32
    return %arg0, %c0_i32, %c0_i32_0 : i32, i32, i32
  }
  func.func @transform_2(%arg0: i32) -> (i32, i32, i32) {
    %c0_i32 = arith.constant 0 : i32
    %c0_i32_0 = arith.constant 0 : i32
    %c0_i32_1 = arith.constant 0 : i32
    return %arg0, %c0_i32, %c0_i32_0 : i32, i32, i32
  }
  func.func @transform_3(%arg0: i32) -> (i32, i32, i32) {
    %c0_i32 = arith.constant 0 : i32
    %c0_i32_0 = arith.constant 0 : i32
    %c0_i32_1 = arith.constant 0 : i32
    %c0_i32_2 = arith.constant 0 : i32
    return %c0_i32, %c0_i32_0, %c0_i32_1 : i32, i32, i32
  }
  func.func @transform_4(%arg0: i32) -> (i32, i32) {
    %c0_i32 = arith.constant 0 : i32
    %c0_i32_0 = arith.constant 0 : i32
    %c0_i32_1 = arith.constant 0 : i32
    return %c0_i32, %c0_i32_0 : i32, i32
  }
  func.func @transform_5(%arg0: i32) -> (i32, i32, i32) {
    %c0_i32 = arith.constant 0 : i32
    %c0_i32_0 = arith.constant 0 : i32
    %c0_i32_1 = arith.constant 0 : i32
    return %arg0, %c0_i32, %c0_i32_0 : i32, i32, i32
  }
}

</mosaic_0001>

<bundles_post_ra>
// kernel: tpu_custom_call.1
= control target key start
LH: loop header
LB: loop body
LE: loop exit
PB: predicated region body
PF: predicated region fallthrough
CT: control target
= control target key end

     0   :  { %s2932_s0 = inlined_call_operand.hbm [shape: f32[8,16,32], index: 0, kind: input, shape index: {}]   ;;  %s2933_s1 = inlined_call_operand.hbm [shape: f32[8,16,16], index: 1, kind: input, shape index: {}]   ;;  %s2934_s2 = inlined_call_operand.hbm [shape: f32[8,2,16], index: 2, kind: input, shape index: {}]   ;;  %s2935_s3 = inlined_call_operand.hbm [shape: f32[2,40,128], index: 3, kind: input, shape index: {}]   ;;  %s2936_s4 = inlined_call_operand.hbm [shape: f32[32,128], index: 4, kind: input, shape index: {}]   ;;  %s2937_s5 = inlined_call_operand.hbm [shape: f32[8,2,128], index: 5, kind: output, shape index: {}]  }
   0x1   :  { %2953 = sst [smem:[#allocation18_spill]] %s2933_s1 }
   0x2   :  { %2954 = sst [smem:[#allocation19_spill]] %s2935_s3 }
   0x3   :  { %10 = vsyncpa [#allocation3], 0 }
   0x4   :  { %12 = vsyncpa [#allocation3 + $0x1], 0 }
   0x5   :  { %13 = vsyncpa [#allocation6], 0 }
   0x6   :  { %15 = vsyncpa [#allocation6 + $0x1], 0 }
   0x7   :  { %16 = vsyncpa [#allocation9], 0 }
   0x8   :  { %17 = vsyncpa [#allocation4], 0 }
   0x9   :  { %19 = vsyncpa [#allocation4 + $0x1], 0  ;;  %s2395_s18 = smov 0   ;;  %s2397_s19 = smov 0  }
   0xa   :  { %s2399_s20 = smov 0   ;;  %s2401_s21 = smov 0  }
   0xb LB: > { %2955 = sst [smem:[#allocation16_spill]] %s2342_s20  ;;  %s2416_s22 = sadd.s32 4294967295, %s2346_s21   ;;  %s2346_s21 = sphi %s2401_s21, %s2995_s21   ;;  %s2342_s20 = sphi %s2399_s20, %s2992_s20   ;;  %s2338_s19 = sphi %s2397_s19, %s2994_s19   ;;  %s2334_s18 = sphi %s2395_s18, %s2993_s18  }
   0xc   : > { %s1690_s23 = sadd.s32 4294967294, %s2346_s21   ;;  %s2420_s24 = sadd.s32 1, %s2346_s21  }
   0xd   : > { %s32_s25 = sadd.s32 1, %s2342_s20  ;;  %s29_s26 = ssub.s32 %s2346_s21, %s2420_s24 }
   0xe   : > { %p39_p0 = scmp.ne.s32.totalorder %s2342_s20, %s2338_s19  ;;  %p30_p1 = scmp.eq.s32.totalorder %s29_s26, 0 }
   0xf   : > { %p40_p2 = scmp.eq.s32.totalorder %s2346_s21, 0  ;;  %p45_p3 = scmp.ne.s32.totalorder %s2338_s19, %s2334_s18 }
  0x10   : > { %p2938_p4 = scmp.eq.s32.totalorder %s2416_s22, 0  ;;  %p163_p7 = scmp.eq.s32.totalorder %s2416_s22, 7 }
  0x11   : > { %s2432_s27 = scalar_select %p30_p1, %s2342_s20, %s32_s25  }
  0x12   : > { %p2434_p5 = por %p40_p2, %p39_p0  ;;  %p2440_p6 = por %p2938_p4, %p45_p3 }
  0x13   : > { %2956 = sst [smem:[#allocation17_spill]] %s2432_s27  ;;  %p169_p8 = scmp.eq.s32.totalorder %s1690_s23, 7 }
  0x14   : > { %s2957_s28 = scalar_select %p2434_p5, 1, 0 }
  0x15   : > { %s2958_s29 = scalar_select %p2440_p6, 1, 0 }
  0x16   : > { %p1691_p9 = scmp.ge.s32.totalorder %s2346_s21, 1  ;;  %p176_p10 = scmp.lt.s32.totalorder %s2346_s21, 9 }
  0x17   : > { %p2447_p11 = por %p163_p7, %p39_p0  ;;  %p2451_p12 = por %p169_p8, %p45_p3 }
  0x18   : > { %p2455_p13 = pnand %p1691_p9, %p176_p10  ;;  %s2348_s8 = smov [#allocation8]  }
  0x19   : > { %s2959_s30 = scalar_select %p2447_p11, 1, 0 }
  0x1a   : > { %s2960_s6 = scalar_select %p2451_p12, 1, 0 }
  0x1b   : > { %s2961_s7 = scalar_select %p2455_p13, 1, 0 }
  0x1c   : > { %p1979_p1 = pneg %p2455_p13  ;;  %s188_s9 = sshll.u32 %s2348_s8, 4  ;;  %s189_s9 = int_to_ptr.vmem [resolvable:$true] %s188_s9 }
  0x1d   : > { %s2469_s11 = sand.u32 1, %s2342_s20   ;;  %s2963_s3 = sld [smem:[#allocation19_spill]] }
  0x1e   : > { %p2463_p2 = pnand %p1979_p1, %p2938_p4 }
  0x20   : > { %s2962_s10 = scalar_select %p2463_p2, 1, 0 }
  0x21   : > { %p2945_p7 = pneg %p2463_p2 }
  0x23   : > { %s2126_s15 = scalar_lea.hbm %s2963_s3, 1280 }
  0x24   : > { %p2127_p3 = scmp.ne.s32.totalorder %s2963_s3, %s2126_s15  ;;  %p2133_p10 = scmp.lt.u32.totalorder %s2126_s15, %s2963_s3 }
  0x26   : > { %p2129_p8 = pnand %p2945_p7, %p2127_p3 }
  0x28   : > { %p2130_p9 = pneg %p2129_p8 }
  0x2a   : > { %p2135_p1 = pnand %p2133_p10, %p2130_p9 }
  0x2c   : > { %2138 = shalt.err (!%p2135_p1)
}
  0x2d   : > { %s2139_s26 = scalar_lea.vmem %s189_s9, 1280  ;;  %p2147_p11 = scmp.lt.s32.totalorder %s189_s9, %s189_s9 }
  0x2e   : > { %p2140_p4 = scmp.ne.s32.totalorder %s189_s9, %s2139_s26  ;;  %p2148_p6 = scmp.lt.s32.totalorder %s2139_s26, %s2139_s26 }
  0x30   : > { %p2142_p0 = pnand %p2140_p4, %p2945_p7  ;;  %p2149_p13 = por %p2148_p6, %p2147_p11 }
  0x32   : > { %p2143_p12 = pneg %p2142_p0 }
  0x34   : > { %p2150_p5 = pnand %p2149_p13, %p2143_p12 }
  0x36   : > { %2153 = shalt.err (!%p2150_p5)
}
  0x37   : > { %s2942_s8 = smov 128   ;;  %s2350_s13 = smov 8  }
  0x38   : > { %1982 = dma.hbm_to_vmem [thread:$0]  (!%p2463_p2), %s2963_s3, 1280, %s189_s9, [#allocation9], %s2942_s8, %s2942_s8, %s2350_s13  }
  0x39   : > { %s2944_s16 = sshll.u32 %s2346_s21, 8  ;;  %p2964_p4 = scmp.ne.s32.totalorder %s2957_s28, 0 }
  0x3a   : > { %p2965_p5 = scmp.lt.s32.totalorder %s2346_s21, 8  ;;  %s236_s23 = sand.u32 1, %s2346_s21  }
  0x3b   : > { %s2967_s1 = sld [smem:[#allocation18_spill]]  ;;  %s2968_s27 = sshll.u32 %s2469_s11, 4 }
  0x3c   : > { %p2502_p6 = pnand %p2965_p5, %p2964_p4  ;;  %s240_s9 = scalar_lea.vmem [#allocation5], %s2968_s27 }
  0x3d   : > { %s247_s28 = sshll.u32 %s240_s9, 4  ;;  %s2518_s14 = scalar_lea.sflag [#allocation6], %s236_s23  ;;  %s2516_s28 = int_to_ptr.vmem [resolvable:$true] %s247_s28 }
  0x3e   : > { %s2966_s17 = scalar_select %p2502_p6, 1, 0 }
  0x3f   : > { %p2524_p12 = pneg %p2502_p6 }
  0x41   : > { %s2512_s12 = scalar_lea.hbm %s2967_s1, %s2944_s16  ;;  %s2159_s27 = scalar_lea.hbm %s2967_s1, 2048 }
  0x42   : > { %s2154_s15 = scalar_lea.hbm %s2512_s12, 256  ;;  %p2160_p3 = scmp.lt.u32.totalorder %s2512_s12, %s2967_s1 }
  0x43   : > { %p2155_p11 = scmp.ne.s32.totalorder %s2512_s12, %s2154_s15  ;;  %p2161_p8 = scmp.lt.u32.totalorder %s2159_s27, %s2154_s15 }
  0x44   : > { %s2969_s8 = scalar_select %p2524_p12, 1, 0 }
  0x45   : > { %p2157_p13 = pnand %p2524_p12, %p2155_p11  ;;  %p2162_p9 = por %p2161_p8, %p2160_p3 }
  0x46   : > { %p2163_p10 = scmp.lt.u32.totalorder %s2154_s15, %s2512_s12 }
  0x47   : > { %p2158_p0 = pneg %p2157_p13 }
  0x48   : > { %p2164_p1 = por %p2163_p10, %p2162_p9 }
  0x4a   : > { %p2165_p4 = pnand %p2164_p1, %p2158_p0 }
  0x4c   : > { %2168 = shalt.err (!%p2165_p4)
}
  0x4d   : > { %s2169_s23 = scalar_lea.vmem %s2516_s28, 256  ;;  %s2351_s25 = smov [#allocation5]  }
  0x4e   : > { %p2170_p5 = scmp.ne.s32.totalorder %s2516_s28, %s2169_s23  ;;  %s2174_s26 = sshll.u32 %s2351_s25, 4  ;;  %s2175_s26 = int_to_ptr.vmem [resolvable:$false] %s2174_s26 }
  0x4f   : > { %s2176_s16 = scalar_lea.vmem %s2175_s26, 512  ;;  %p2177_p7 = scmp.lt.s32.totalorder %s2516_s28, %s2175_s26 }
  0x50   : > { %p2172_p11 = pnand %p2170_p5, %p2524_p12  ;;  %p2178_p2 = scmp.lt.s32.totalorder %s2176_s16, %s2169_s23 }
  0x52   : > { %p2173_p13 = pneg %p2172_p11  ;;  %p2179_p3 = por %p2178_p2, %p2177_p7 }
  0x54   : > { %p2180_p8 = pnand %p2179_p3, %p2173_p13 }
  0x56   : > { %2183 = shalt.err (!%p2180_p8)
}
  0x57   : > { %s2970_s15 = smov 128   ;;  %s2352_s27 = smov [#allocation10]  }
  0x58   : > { %1992 = dma.hbm_to_vmem [thread:$0]  (!%p2502_p6), %s2512_s12, 256, %s2516_s28, %s2518_s14, %s2970_s15, %s2970_s15, %s2350_s13  }
  0x59   : > { %s201_s9 = sshll.u32 %s2352_s27, 4  ;;  %s2184_s23 = scalar_lea.hbm %s2936_s4, 512  ;;  %s202_s9 = int_to_ptr.vmem [resolvable:$true] %s201_s9 }
  0x5a   : > { %p2185_p2 = scmp.ne.s32.totalorder %s2936_s4, %s2184_s23  ;;  %p2971_p7 = scmp.ne.s32.totalorder %s2962_s10, 0 }
  0x5b   : > { %p2191_p1 = scmp.lt.u32.totalorder %s2184_s23, %s2936_s4 }
  0x5c   : > { %p2972_p0 = pneg %p2971_p7 }
  0x5e   : > { %p2187_p9 = pnand %p2185_p2, %p2972_p0 }
  0x60   : > { %p2188_p10 = pneg %p2187_p9 }
  0x62   : > { %p2193_p4 = pnand %p2191_p1, %p2188_p10 }
  0x64   : > { %2196 = shalt.err (!%p2193_p4)
}
  0x65   : > { %s2197_s12 = scalar_lea.vmem %s202_s9, 512  ;;  %p2973_p11 = pmov %p2972_p0 }
  0x66   : > { %p2198_p5 = scmp.ne.s32.totalorder %s202_s9, %s2197_s12  ;;  %p2205_p8 = scmp.lt.s32.totalorder %s202_s9, %s202_s9 }
  0x67   : > { %p2206_p6 = scmp.lt.s32.totalorder %s2197_s12, %s2197_s12 }
  0x68   : > { %p2200_p13 = pnand %p2198_p5, %p2973_p11 }
  0x69   : > { %p2207_p12 = por %p2206_p6, %p2205_p8 }
  0x6a   : > { %p2201_p3 = pneg %p2200_p13 }
  0x6c   : > { %p2208_p0 = pnand %p2207_p12, %p2201_p3 }
  0x6e   : > { %2211 = shalt.err (!%p2208_p0)
}
  0x6f   : > { %1985 = dma.hbm_to_vmem [thread:$0]  (!%p2971_p7), %s2936_s4, 512, %s202_s9, [#allocation9], %s2970_s15, %s2970_s15, %s2350_s13  }
  0x70   : > { %s2974_s20 = sshll.u32 %s2346_s21, 8  ;;  %s2975_s23 = sshll.u32 %s2469_s11, 4 }
  0x71   : > { %s2579_s25 = scalar_lea.hbm %s2932_s0, %s2974_s20  ;;  %s219_s10 = scalar_lea.vmem [#allocation2], %s2975_s23 }
  0x72   : > { %s226_s26 = sshll.u32 %s219_s10, 4  ;;  %s1701_s16 = sshll.u32 %s2469_s11, 1  ;;  %s2583_s26 = int_to_ptr.vmem [resolvable:$true] %s226_s26 }
  0x73   : > { %s216_s12 = scalar_lea.sflag [#allocation3], %s2469_s11  ;;  %s2212_s1 = scalar_lea.hbm %s2579_s25, 256 }
  0x74   : > { %p2213_p6 = scmp.ne.s32.totalorder %s2579_s25, %s2212_s1  ;;  %p2976_p12 = scmp.ne.s32.totalorder %s2969_s8, 0 }
  0x75   : > { %s2217_s20 = scalar_lea.hbm %s2932_s0, 2048  ;;  %p2218_p9 = scmp.lt.u32.totalorder %s2579_s25, %s2932_s0 }
  0x76   : > { %p2215_p2 = pnand %p2213_p6, %p2976_p12  ;;  %p2219_p10 = scmp.lt.u32.totalorder %s2217_s20, %s2212_s1 }
  0x77   : > { %p2221_p4 = scmp.lt.u32.totalorder %s2212_s1, %s2579_s25 }
  0x78   : > { %p2216_p7 = pneg %p2215_p2  ;;  %p2220_p1 = por %p2219_p10, %p2218_p9 }
  0x7a   : > { %p2222_p5 = por %p2221_p4, %p2220_p1 }
  0x7c   : > { %p2223_p11 = pnand %p2222_p5, %p2216_p7 }
  0x7e   : > { %2226 = shalt.err (!%p2223_p11)
}
  0x7f   : > { %s2227_s23 = scalar_lea.vmem %s2583_s26, 256  ;;  %s2353_s10 = smov [#allocation2]  }
  0x80   : > { %p2228_p13 = scmp.ne.s32.totalorder %s2583_s26, %s2227_s23  ;;  %s2232_s9 = sshll.u32 %s2353_s10, 4  ;;  %s2233_s9 = int_to_ptr.vmem [resolvable:$false] %s2232_s9 }
  0x81   : > { %s2234_s3 = scalar_lea.vmem %s2233_s9, 512  ;;  %p2235_p0 = scmp.lt.s32.totalorder %s2583_s26, %s2233_s9 }
  0x82   : > { %p2230_p3 = pnand %p2228_p13, %p2976_p12  ;;  %p2236_p6 = scmp.lt.s32.totalorder %s2234_s3, %s2227_s23 }
  0x84   : > { %p2231_p8 = pneg %p2230_p3  ;;  %p2237_p2 = por %p2236_p6, %p2235_p0 }
  0x86   : > { %p2238_p9 = pnand %p2237_p2, %p2231_p8 }
  0x88   : > { %2241 = shalt.err (!%p2238_p9)
}
  0x89   : > { %p2977_p7 = scmp.ne.s32.totalorder %s2966_s17, 0  ;;  %s1702_s1 = sshll.u32 %s2346_s21, 5 }
  0x8a   : > { %s2617_s27 = scalar_lea.hbm %s2934_s2, %s1702_s1  ;;  %s261_s23 = scalar_lea.vmem [#allocation7], %s1701_s16 }
  0x8b   : > { %1989 = dma.hbm_to_vmem [thread:$0]  (!%p2977_p7), %s2579_s25, 256, %s2583_s26, %s216_s12, %s2970_s15, %s2970_s15, %s2350_s13  }
  0x8c   : > { %s268_s10 = sshll.u32 %s261_s23, 4  ;;  %s2242_s9 = scalar_lea.hbm %s2617_s27, 32  ;;  %s269_s10 = int_to_ptr.vmem [resolvable:$true] %s268_s10 }
  0x8d   : > { %p2243_p10 = scmp.ne.s32.totalorder %s2617_s27, %s2242_s9  ;;  %s2247_s25 = scalar_lea.hbm %s2934_s2, 256 }
  0x8e   : > { %p2248_p5 = scmp.lt.u32.totalorder %s2617_s27, %s2934_s2  ;;  %p2249_p11 = scmp.lt.u32.totalorder %s2247_s25, %s2242_s9 }
  0x8f   : > { %p2245_p1 = pnand %p2243_p10, %p2976_p12  ;;  %p2251_p3 = scmp.lt.u32.totalorder %s2242_s9, %s2617_s27 }
  0x90   : > { %p2250_p13 = por %p2249_p11, %p2248_p5 }
  0x91   : > { %p2246_p4 = pneg %p2245_p1 }
  0x92   : > { %p2252_p8 = por %p2251_p3, %p2250_p13 }
  0x94   : > { %p2253_p0 = pnand %p2252_p8, %p2246_p4 }
  0x96   : > { %2256 = shalt.err (!%p2253_p0)
}
  0x97   : > { %s2257_s11 = scalar_lea.vmem %s269_s10, 32  ;;  %s2354_s16 = smov [#allocation7]  }
  0x98   : > { %p2258_p6 = scmp.ne.s32.totalorder %s269_s10, %s2257_s11  ;;  %s2262_s3 = sshll.u32 %s2354_s16, 4  ;;  %s2263_s3 = int_to_ptr.vmem [resolvable:$false] %s2262_s3 }
  0x99   : > { %s2264_s1 = scalar_lea.vmem %s2263_s3, 64  ;;  %p2265_p10 = scmp.lt.s32.totalorder %s269_s10, %s2263_s3 }
  0x9a   : > { %p2260_p2 = pnand %p2258_p6, %p2976_p12  ;;  %p2266_p1 = scmp.lt.s32.totalorder %s2264_s1, %s2257_s11 }
  0x9c   : > { %p2261_p9 = pneg %p2260_p2  ;;  %p2267_p7 = por %p2266_p1, %p2265_p10 }
  0x9e   : > { %p2268_p5 = pnand %p2267_p7, %p2261_p9 }
  0xa0   : > { %2271 = shalt.err (!%p2268_p5)
}
  0xa1   : > { %p2978_p11 = scmp.ne.s32.totalorder %s2966_s17, 0  ;;  %p2979_p4 = scmp.ne.s32.totalorder %s2961_s7, 0 }
  0xa2   : > { %s2642_s8 = sand.u32 (!%p2979_p4), 1, %s2338_s19   ;;  %p2980_p12 = scmp.ne.s32.totalorder (!%p2979_p4), %s2958_s29, 0 }
  0xa3   : > { %1995 = dma.hbm_to_vmem [thread:$0]  (!%p2978_p11), %s2617_s27, 32, %s269_s10, %s2518_s14  }
  0xa4   : > { %277 = sbr.rel (%p2979_p4) target bundleno = 4612 (0x1204), region = 40  ;;  %s1704_s20 = sshll.u32 (!%p2979_p4), %s2642_s8, 4 }
  0xa5   : > { %s280_s28 = scalar_lea.sflag (!%p2979_p4), [#allocation3], %s2642_s8  ;;  %s283_s23 = scalar_lea.vmem (!%p2979_p4), [#allocation2], %s1704_s20 }
  0xab   : > { %2317 = dma.done.wait (%p2980_p12), %s280_s28, 256  }
  0xac   : > { %2319 = vsyncadd (%p2980_p12), %s280_s28, 4294967040  ;;  %s288_s17 = sand.u32 1, %s2416_s22   ;;  %s2651_s7 = scalar_lea.vmem [#allocation5], %s1704_s20 }
  0xad   : > { %s289_s14 = scalar_lea.sflag [#allocation6], %s288_s17 }
  0xae   : > { %2321 = dma.done.wait (%p2980_p12), %s289_s14, 288  }
  0xaf   : > { %2323 = vsyncadd (%p2980_p12), %s289_s14, 4294967008  ;;  %s1706_s27 = sshll.u32 %s2642_s8, 1  ;;  %p2981_p7 = scmp.eq.s32.totalorder %s2416_s22, 0 }
  0xb0   : > { %s2660_s10 = scalar_lea.vmem [#allocation7], %s1706_s27 }
  0xb1   : > { %2325 = dma.done.wait (%p2981_p7), [#allocation9], 1792   ;;  %p2982_p13 = pmov %p2981_p7 }
  0xb2   : > { %vm371_vm0 = vcmask 261120   ;;  %v362_v0 = vld [vmem:[#allocation8] sm:$0xff]  ;;  %v363_v1 = vld [vmem:[#allocation8 + $0x8] sm:$0xff]  ;;  %v364_v2 = vld [vmem:[#allocation8 + $0x10] sm:$0xff]  ;;  %v354_v8 = vlaneseq  ;;  %vm459_vm1 = vcmask 130048   ;;  %s2355_s29 = smov 112  }
  0xb3   : > { %2327 = vsyncadd (%p2982_p13), [#allocation9], 4294965504  ;;  %v1890_v3 = vpack.c.bf16 %v363_v1, %v362_v0  ;;  %v365_v4 = vld [vmem:[#allocation8 + $0x18] sm:$0xff]  ;;  %v2672_v11 = vld [vmem:[#allocation8 + $0x20] sm:$0xff]  ;;  %s2356_s9 = smov 80   ;;  %s2357_s13 = smov 96  }
  0xb4   : > { %v346_v5 = vld [vmem:[%s283_s23] sm:$0xff]  ;;  %v1894_v6 = vpack.c.bf16 %v365_v4, %v364_v2  ;;  %v347_v7 = vld [vmem:[%s283_s23 + $0x8] sm:$0xff]  ;;  %v2669_v9 = vshrl.u32 %v354_v8, 7  ;;  %vm2697_vm2 = vmpackc.low %vm459_vm1, %vm459_vm1  ;;  %s2358_s15 = smov 64   ;;  %s2359_s25 = smov 16   ;;  %vm2362_vm9 = vmmov 0  }
  0xb5   : > { %1808 = vmatprep.mubr.msk.f32.mxu0 %vm371_vm0, %v346_v5  ;;  %1891 = vmatprep.subr.bf16.mxu0 %v1890_v3  ;;  %v2714_v29 = vld [vmem:[%s2651_s7 + $0x8] sm:$0xff]  ;;  %v2717_v30 = vld [vmem:[%s2651_s7] sm:$0xff]  ;;  %s2360_s26 = smov 32   ;;  %s345_s12 = scalar_lea.vmem [#allocation11], %s1706_s27 }
  0xb6   : > { %1893 = vmatpush3.bf16.msra.mxu0 %v1890_v3  ;;  %v369_v10 = vsub.s32 0, %v2669_v9  ;;  %v1711_v31 = vadd.f32 -1.0, %v2714_v29  ;;  %v1710_v32 = vadd.f32 -1.0, %v2717_v30  ;;  %s1558_s11 = sshll.u32 %s345_s12, 4  ;;  %s1747_s16 = sshll.u32 %s2416_s22, 5  ;;  %s2886_s11 = int_to_ptr.vmem [resolvable:$true] %s1558_s11 }
  0xb7   : > { %1895 = vmatprep.subr.bf16.mxu0 %v1894_v6  ;;  %s2891_s20 = scalar_lea.hbm %s2937_s5, %s1747_s16  ;;  %s1545_s28 = scalar_lea.sflag [#allocation4], %s2642_s8 }
  0xb8   : > { %v370_v12 = vrot.slane %v2672_v11, %v369_v10  ;;  %v2721_v33 = vmul.f32 1e+30, %v1711_v31  ;;  %v2723_v35 = vmul.f32 1e+30, %v1710_v32  ;;  %s2272_s23 = scalar_lea.vmem %s2886_s11, 32  ;;  %p2989_p8 = scmp.ne.s32.totalorder %s2959_s30, 0 }
  0xb9   : > { %p2273_p3 = scmp.ne.s32.totalorder %s2886_s11, %s2272_s23  ;;  %s2364_s22 = smov [#allocation11]  }
  0xba   : > { %1897 = vmatpush3.bf16.msra.mxu0 %v1894_v6  ;;  %s2276_s17 = sshll.u32 %s2364_s22, 4  ;;  %s2277_s17 = int_to_ptr.vmem [resolvable:$false] %s2276_s17 }
  0xbb   : > { %p2274_p0 = pnand %p2273_p3, %p2989_p8  ;;  %s2278_s14 = scalar_lea.vmem %s2277_s17, 64 }
  0xbc   : > { %p2279_p2 = scmp.lt.s32.totalorder %s2886_s11, %s2277_s17  ;;  %p2280_p9 = scmp.lt.s32.totalorder %s2278_s14, %s2272_s23 }
  0xbd   : > { %1809 = vmatmul.mubr.msk.f32.vlgmr.msra.gmra.mrb[0].mxu0 %vm371_vm0, %v347_v7  ;;  %p2275_p6 = pneg %p2274_p0 }
  0xbe   : > { %p2281_p10 = por %p2280_p9, %p2279_p2 }
  0xc0   : > { %p2282_p1 = pnand %p2281_p10, %p2275_p6 }
 0x190   : > { %v1810_v13 = vpop.f32.mrb[0].mxu0 }
 0x191   : > { %v2677_v14 = vadd.f32 %v1810_v13, %v370_v12  ;;  %v444_v15 = vpop.f32.mrb[1].mxu0 }
 0x192   : > { %v2679_v16 = vadd.f32 %v444_v15, %v370_v12 }
 0x193   : > { %585 = vrot.lane.b32.xlu1 %v2677_v14, %s2355_s29 }
 0x194   : > { %1815 = vmatprep.mubr.msk.f32.mxu1 %vm459_vm1, %v2679_v16  ;;  %v2687_v17 = vpack.i.bf16 %v2677_v14, %v2679_v16 }
 0x196   : > { %2052 = vrot.lane.b32.xlu0 %v2687_v17, %s2356_s9 }
 0x197   : > { %2057 = vrot.lane.b32.xlu1 %v2687_v17, %s2357_s13 }
 0x19a   : > { %583 = vrot.lane.b32.xlu0 %v2679_v16, %s2355_s29 }
 0x205   : > { %v586_v18 = vpop.permute.xlu1 %585 }
 0x208   : > { %v2053_v19 = vpop.permute.xlu0 %2052 }
 0x209   : > { %v2055_v20 = vunpack.i.h.bf16 %v2053_v19  ;;  %v2054_v21 = vunpack.i.l.bf16 %v2053_v19  ;;  %v2058_v22 = vpop.permute.xlu1 %2057 }
 0x20a   : > { %v2060_v23 = vunpack.i.h.bf16 %v2058_v22  ;;  %v2059_v24 = vunpack.i.l.bf16 %v2058_v22 }
 0x20b   : > { %v1904_v26 = vpack.c.bf16 %v2055_v20, %v2054_v21 }
 0x20c   : > { %v584_v27 = vpop.permute.xlu0 %583  ;;  %v1898_v28 = vpack.c.bf16 %v2060_v23, %v2059_v24 }
 0x20d   : > { %1906 = vmatprep.subr.msk.bf16.mxu0 %vm2697_vm2, %v1904_v26  ;;  %1822 = vmatprep.mubr.msk.f32.mxu0 %vm459_vm1, %v584_v27 }
 0x20e   : > { %1900 = vmatprep.subr.msk.bf16.mxu1 %vm2697_vm2, %v1898_v28  ;;  %1909 = vmatpush3.bf16.xpose.msk.msra.mxu0 %vm2697_vm2, %v1904_v26 }
 0x20f   : > { %1903 = vmatpush3.bf16.xpose.msk.msra.mxu1 %vm2697_vm2, %v1898_v28 }
 0x215   : > { %1823 = vmatmul.mubr.msk.f32.vlgmr.msra.gmra.mrb[2].mxu0 %vm459_vm1, %v586_v18  ;;  %v355_v18 = vand.u32 127, %v354_v8 }
 0x216   : > { %1816 = vmatmul.mubr.msk.f32.vlgmr.msra.gmra.mrb[0].mxu1 %vm459_vm1, %v2677_v14 }
 0x217   : > { %vm359_vm3 = vcmp.ge.s32.totalorder %v355_v18, 16  ;;  %vm360_vm4 = vcmp.lt.s32.totalorder %v355_v18, 32  ;;  %vm357_vm5 = vcmp.lt.s32.totalorder %v355_v18, 16 }
 0x218   : > { %vm361_vm6 = vmand %vm359_vm3, %vm360_vm4 }
 0x219   : > { %vm2744_vm7 = vmpackc.low %vm357_vm5, %vm357_vm5 }
 0x21a   : > { %vm2748_vm8 = vmpackc.low %vm361_vm6, %vm361_vm6 }
 0x2e8   : > { %v1824_v34 = vpop.f32.mrb[2].mxu0 }
 0x2e9   : > { %v675_v36 = vmul.f32 0.25, %v1824_v34  ;;  %v1817_v37 = vpop.f32.mrb[0].mxu1  ;;  %v665_v38 = vpop.f32.mrb[3].mxu0 }
 0x2ea   : > { %v674_v39 = vmul.f32 0.25, %v665_v38  ;;  %v534_v40 = vpop.f32.mrb[1].mxu1  ;;  %v544_v45 = vmul.f32 0.25, %v1817_v37 }
 0x2eb   : > { %v543_v41 = vmul.f32 0.25, %v534_v40  ;;  %v677_v42 = vadd.f32 %v675_v36, %v2721_v33 }
 0x2ec   : > { %v676_v43 = vadd.f32 %v674_v39, %v2723_v35  ;;  %v546_v49 = vadd.f32 %v544_v45, %v2721_v33 }
 0x2ed   : > { %v681_v44 = vsel %vm459_vm1, %v677_v42, -inf  ;;  %v545_v47 = vadd.f32 %v543_v41, %v2723_v35 }
 0x2ee   : > { %682 = vmax.xlane.f32.xlu1 %v681_v44  ;;  %v678_v46 = vsel %vm459_vm1, %v676_v43, -inf  ;;  %v550_v50 = vsel %vm459_vm1, %v546_v49, -inf }
 0x2ef   : > { %679 = vmax.xlane.f32.xlu0 %v678_v46  ;;  %v547_v48 = vsel %vm459_vm1, %v545_v47, -inf }
 0x2f3   : > { %548 = vmax.xlane.f32.xlu0 %v547_v48 }
 0x2f7   : > { %551 = vmax.xlane.f32.xlu0 %v550_v50 }
 0x37b   : > { %v683_v51 = vpop.xlane.xlu1 %682 }
 0x37c   : > { %v685_v52 = vsub.f32 %v677_v42, %v683_v51  ;;  %v680_v53 = vpop.xlane.xlu0 %679 }
 0x37d   : > { %v684_v54 = vsub.f32 %v676_v43, %v680_v53 }
 0x37e   : > { %v688_v55 = vmul.f32 1.442695, %v685_v52 }
 0x37f   : > { %v686_v56 = vmul.f32 1.442695, %v684_v54 }
 0x380   : > { %2086 = vpow2.f32 %v688_v55  ;;  %v549_v57 = vpop.xlane.xlu0 %548 }
 0x381   : > { %2088 = vpow2.f32 %v686_v56  ;;  %v553_v6 = vsub.f32 %v545_v47, %v549_v57 }
 0x383   : > { %v555_v7 = vmul.f32 1.442695, %v553_v6 }
 0x384   : > { %v552_v58 = vpop.xlane.xlu0 %551 }
 0x385   : > { %v554_v59 = vsub.f32 %v546_v49, %v552_v58 }
 0x387   : > { %v557_v60 = vmul.f32 1.442695, %v554_v59 }
 0x389   : > { %2090 = vpow2.f32 %v557_v60 }
 0x38a   : > { %v2087_v61 = vpop.eup %2086  ;;  %2092 = vpow2.f32 %v555_v7 }
 0x38b   : > { %v2089_v62 = vpop.eup %2088  ;;  %v691_v63 = vmul.f32 %v2087_v61, %v2714_v29 }
 0x38c   : > { %v690_v0 = vmul.f32 %v2089_v62, %v2717_v30 }
 0x38d   : > { %v695_v1 = vsel %vm459_vm1, %v691_v63, 0.0 }
 0x38e   : > { %696 = vadd.xlane.f32.xlu0 %v695_v1  ;;  %v692_v2 = vsel %vm459_vm1, %v690_v0, 0.0 }
 0x38f   : > { %693 = vadd.xlane.f32.xlu1 %v692_v2 }
 0x393   : > { %v2091_v3 = vpop.eup %2090 }
 0x394   : > { %v560_v4 = vmul.f32 %v2091_v3, %v2714_v29  ;;  %v2093_v12 = vpop.eup %2092 }
 0x395   : > { %v559_v13 = vmul.f32 %v2093_v12, %v2717_v30  ;;  %v875_v12 = vld [vmem:[#allocation8 + $0x28] sm:$0xff] }
 0x396   : > { %v564_v5 = vsel %vm459_vm1, %v560_v4, 0.0 }
 0x397   : > { %565 = vadd.xlane.f32.xlu0 %v564_v5  ;;  %v561_v15 = vsel %vm459_vm1, %v559_v13, 0.0  ;;  %v854_v5 = vsub.s32 1, %v2669_v9 }
 0x399   : > { %v855_v7 = vrot.slane %v2672_v11, %v854_v5 }
 0x3a0   : > { %2062 = vrot.lane.b32.xlu1 %v2687_v17, %s2358_s15 }
 0x3c4   : > { %562 = vadd.xlane.f32.xlu1 %v561_v15  ;;  %v877_v15 = vld [vmem:[#allocation8 + $0x38] sm:$0xff] }
 0x41b   : > { %v697_v19 = vpop.xlane.xlu0 %696 }
 0x41c   : > { %v699_v20 = vmax.f32 %v697_v19, 1e-30  ;;  %v694_v21 = vpop.xlane.xlu1 %693  ;;  %v878_v19 = vld [vmem:[#allocation8 + $0x40] sm:$0xff] }
 0x41d   : > { %v698_v22 = vmax.f32 %v694_v21, 1e-30 }
 0x41e   : > { %2094 = vrcp.f32 %v699_v20  ;;  %v1926_v20 = vpack.c.bf16 %v878_v19, %v877_v15 }
 0x41f   : > { %2096 = vrcp.f32 %v698_v22 }
 0x420   : > { %v2063_v17 = vpop.permute.xlu1 %2062 }
 0x421   : > { %v2065_v23 = vunpack.i.h.bf16 %v2063_v17  ;;  %v2064_v24 = vunpack.i.l.bf16 %v2063_v17 }
 0x423   : > { %v1910_v27 = vpack.c.bf16 %v2065_v23, %v2064_v24 }
 0x424   : > { %v566_v37 = vpop.xlane.xlu0 %565 }
 0x425   : > { %1912 = vmatprep.subr.msk.bf16.mxu1 %vm2744_vm7, %v1910_v27  ;;  %v568_v39 = vmax.f32 %v566_v37, 1e-30 }
 0x426   : > { %1915 = vmatpush3.bf16.msk.msra.mxu1 %vm2744_vm7, %v1910_v27 }
 0x427   : > { %1918 = vmatprep.subr.msk.bf16.mxu1 %vm2748_vm8, %v1910_v27 }
 0x428   : > { %v2095_v28 = vpop.eup %2094 }
 0x429   : > { %v2097_v31 = vpop.eup %2096  ;;  %v703_v32 = vmul.f32 %v2095_v28, %v691_v63 }
 0x42a   : > { %1921 = vmatpush3.bf16.msk.msra.mxu1 %vm2748_vm8, %v1910_v27  ;;  %v702_v34 = vmul.f32 %v2097_v31, %v690_v0 }
 0x42b   : > { %712 = vrot.lane.b32.xlu1 %v703_v32, %s2359_s25 }
 0x42c   : > { %710 = vrot.lane.b32.xlu0 %v702_v34, %s2359_s25 }
 0x451   : > { %v563_v36 = vpop.xlane.xlu1 %562 }
 0x452   : > { %v567_v38 = vmax.f32 %v563_v36, 1e-30 }
 0x454   : > { %2098 = vrcp.f32 %v567_v38 }
 0x455   : > { %2100 = vrcp.f32 %v568_v39 }
 0x45e   : > { %v2099_v40 = vpop.eup %2098 }
 0x45f   : > { %v2101_v41 = vpop.eup %2100  ;;  %v571_v43 = vmul.f32 %v2099_v40, %v559_v13  ;;  %v876_v13 = vld [vmem:[#allocation8 + $0x30] sm:$0xff] }
 0x460   : > { %v572_v44 = vmul.f32 %v2101_v41, %v560_v4  ;;  %v864_v4 = vsub.s32 2, %v2669_v9  ;;  %v1922_v18 = vpack.c.bf16 %v876_v13, %v875_v12 }
 0x462   : > { %v865_v6 = vrot.slane %v2672_v11, %v864_v4  ;;  %1923 = vmatprep.subr.bf16.mxu0 %v1922_v18 }
 0x463   : > { %1925 = vmatpush3.bf16.msra.mxu0 %v1922_v18 }
 0x464   : > { %1927 = vmatprep.subr.bf16.mxu0 %v1926_v20 }
 0x467   : > { %1929 = vmatpush3.bf16.msra.mxu0 %v1926_v20 }
 0x49d   : > { %v713_v42 = vpop.permute.xlu1 %712 }
 0x49e   : > { %v711_v45 = vpop.permute.xlu0 %710  ;;  %v717_v47 = vsel %vm459_vm1, %v572_v44, %v713_v42 }
 0x49f   : > { %v716_v46 = vsel %vm459_vm1, %v571_v43, %v711_v45  ;;  %v2792_v45 = vld [vmem:[#allocation8 + $0x48] sm:$0xff] }
 0x4a0   : > { %1833 = vmatprep.mubr.msk.f32.mxu1 %vm371_vm0, %v716_v46  ;;  %v883_v46 = vrot.slane %v2792_v45, %v369_v10 }
 0x4a1   : > { %1834 = vmatmul.mubr.msk.f32.vlgmr.msra.gmra.mrb[2].mxu1 %vm371_vm0, %v717_v47 }
 0x574   : > { %v1835_v48 = vpop.f32.mrb[2].mxu1 }
 0x575   : > { %803 = vrot.lane.b32.xlu0 %v1835_v48, %s2357_s13  ;;  %v790_v49 = vpop.f32.mrb[3].mxu1 }
 0x576   : > { %801 = vrot.lane.b32.xlu1 %v790_v49, %s2357_s13 }
 0x5e7   : > { %v804_v50 = vpop.permute.xlu0 %803 }
 0x5e8   : > { %v808_v51 = vadd.f32 %v804_v50, %v2677_v14  ;;  %v802_v52 = vpop.permute.xlu1 %801 }
 0x5e9   : > { %v807_v53 = vadd.f32 %v802_v52, %v2679_v16 }
 0x5ea   : > { %813 = vrot.lane.b32.xlu0 %v808_v51, %s2360_s26 }
 0x5eb   : > { %811 = vrot.lane.b32.xlu1 %v807_v53, %s2360_s26 }
 0x65c   : > { %v814_v54 = vpop.permute.xlu0 %813 }
 0x65d   : > { %v812_v55 = vpop.permute.xlu1 %811  ;;  %v820_v56 = vsel %vm371_vm0, %v814_v54, 0.0 }
 0x65e   : > { %821 = vadd.xlane.f32.xlu0 %v820_v56  ;;  %v817_v57 = vsel %vm371_vm0, %v812_v55, 0.0 }
 0x65f   : > { %818 = vadd.xlane.f32.xlu1 %v817_v57 }
 0x6eb   : > { %v822_v58 = vpop.xlane.xlu0 %821 }
 0x6ec   : > { %v825_v59 = vmul.f32 0.03125, %v822_v58  ;;  %v819_v60 = vpop.xlane.xlu1 %818 }
 0x6ed   : > { %v824_v14 = vmul.f32 0.03125, %v819_v60 }
 0x6ee   : > { %v827_v61 = vsub.f32 %v808_v51, %v825_v59 }
 0x6ef   : > { %v826_v62 = vsub.f32 %v807_v53, %v824_v14 }
 0x6f0   : > { %v829_v16 = vmul.f32 %v827_v61, %v827_v61 }
 0x6f1   : > { %v828_v63 = vmul.f32 %v826_v62, %v826_v62 }
 0x6f2   : > { %834 = vrot.lane.b32.xlu1 %v829_v16, %s2360_s26 }
 0x6f3   : > { %832 = vrot.lane.b32.xlu0 %v828_v63, %s2360_s26 }
 0x764   : > { %v835_v0 = vpop.permute.xlu1 %834 }
 0x765   : > { %v833_v1 = vpop.permute.xlu0 %832  ;;  %v841_v2 = vsel %vm371_vm0, %v835_v0, 0.0 }
 0x766   : > { %842 = vadd.xlane.f32.xlu0 %v841_v2  ;;  %v838_v3 = vsel %vm371_vm0, %v833_v1, 0.0 }
 0x767   : > { %839 = vadd.xlane.f32.xlu1 %v838_v3 }
 0x778   : > { %867 = vrot.lane.b32.xlu1 %v865_v6, %s2357_s13 }
 0x77c   : > { %857 = vrot.lane.b32.xlu0 %v855_v7, %s2357_s13 }
 0x7f3   : > { %v843_v21 = vpop.xlane.xlu0 %842 }
 0x7f4   : > { %v845_v22 = vmul.f32 0.03125, %v843_v21  ;;  %v840_v17 = vpop.xlane.xlu1 %839 }
 0x7f5   : > { %v844_v23 = vmul.f32 0.03125, %v840_v17 }
 0x7f6   : > { %v847_v24 = vadd.f32 1e-05, %v845_v22 }
 0x7f7   : > { %v846_v11 = vadd.f32 1e-05, %v844_v23  ;;  %v858_v28 = vpop.permute.xlu0 %857 }
 0x7f8   : > { %2102 = vrsqrt.f32 %v847_v24  ;;  %v868_v36 = vpop.permute.xlu1 %867 }
 0x7f9   : > { %2104 = vrsqrt.f32 %v846_v11 }
 0x802   : > { %v2103_v27 = vpop.eup %2102 }
 0x803   : > { %v2105_v31 = vpop.eup %2104  ;;  %v851_v32 = vmul.f32 %v2103_v27, %v827_v61 }
 0x804   : > { %v850_v34 = vmul.f32 %v2105_v31, %v826_v62 }
 0x805   : > { %v861_v37 = vmul.f32 %v858_v28, %v851_v32 }
 0x806   : > { %v860_v38 = vmul.f32 %v858_v28, %v850_v34 }
 0x807   : > { %v871_v39 = vadd.f32 %v868_v36, %v861_v37 }
 0x808   : > { %v870_v40 = vadd.f32 %v868_v36, %v860_v38 }
 0x809   : > { %v873_v41 = vmax.f32 %v871_v39, 0.0 }
 0x80a   : > { %v872_v42 = vmax.f32 %v870_v40, 0.0 }
 0x80b   : > { %888 = vrot.lane.b32.xlu0 %v873_v41, %s2360_s26 }
 0x80c   : > { %886 = vrot.lane.b32.xlu1 %v872_v42, %s2360_s26 }
 0x87d   : > { %v889_v44 = vpop.permute.xlu0 %888 }
 0x87e   : > { %v887_v43 = vpop.permute.xlu1 %886 }
 0x87f   : > { %1844 = vmatprep.mubr.msk.f32.mxu0 %vm371_vm0, %v887_v43 }
 0x880   : > { %1845 = vmatmul.mubr.msk.f32.vlgmr.msra.gmra.mrb[4].mxu0 %vm371_vm0, %v889_v44 }
 0x953   : > { %v1846_v47 = vpop.f32.mrb[4].mxu0 }
 0x954   : > { %v2797_v48 = vadd.f32 %v1846_v47, %v883_v46  ;;  %v960_v49 = vpop.f32.mrb[5].mxu0 }
 0x955   : > { %v2799_v50 = vadd.f32 %v960_v49, %v883_v46 }
 0x957   : > { %1096 = vrot.lane.b32.xlu0 %v2799_v50, %s2355_s29  ;;  %1851 = vmatprep.mubr.msk.f32.mxu1 %vm459_vm1, %v2799_v50  ;;  %v2807_v51 = vpack.i.bf16 %v2797_v48, %v2799_v50 }
 0x959   : > { %2067 = vrot.lane.b32.xlu1 %v2807_v51, %s2356_s9 }
 0x95b   : > { %2072 = vrot.lane.b32.xlu0 %v2807_v51, %s2357_s13 }
 0x95d   : > { %1098 = vrot.lane.b32.xlu1 %v2797_v48, %s2355_s29 }
 0x9c9   : > { %v1097_v10 = vpop.permute.xlu0 %1096 }
 0x9ca   : > { %1858 = vmatprep.mubr.msk.f32.mxu0 %vm459_vm1, %v1097_v10 }
 0x9cb   : > { %v2068_v52 = vpop.permute.xlu1 %2067 }
 0x9cc   : > { %v2070_v53 = vunpack.i.h.bf16 %v2068_v52  ;;  %v2069_v54 = vunpack.i.l.bf16 %v2068_v52 }
 0x9cd   : > { %v2073_v55 = vpop.permute.xlu0 %2072 }
 0x9ce   : > { %v1936_v56 = vpack.c.bf16 %v2070_v53, %v2069_v54  ;;  %v2075_v57 = vunpack.i.h.bf16 %v2073_v55  ;;  %v2074_v58 = vunpack.i.l.bf16 %v2073_v55 }
 0x9cf   : > { %v1099_v60 = vpop.permute.xlu1 %1098 }
 0x9d0   : > { %v1930_v59 = vpack.c.bf16 %v2075_v57, %v2074_v58  ;;  %1938 = vmatprep.subr.msk.bf16.mxu0 %vm2697_vm2, %v1936_v56 }
 0x9d1   : > { %1941 = vmatpush3.bf16.xpose.msk.msra.mxu0 %vm2697_vm2, %v1936_v56 }
 0x9d2   : > { %1932 = vmatprep.subr.msk.bf16.mxu1 %vm2697_vm2, %v1930_v59 }
 0x9d3   : > { %1935 = vmatpush3.bf16.xpose.msk.msra.mxu1 %vm2697_vm2, %v1930_v59 }
 0x9d8   : > { %1859 = vmatmul.mubr.msk.f32.vlgmr.msra.gmra.mrb[6].mxu0 %vm459_vm1, %v1099_v60 }
 0x9da   : > { %1852 = vmatmul.mubr.msk.f32.vlgmr.msra.gmra.mrb[4].mxu1 %vm459_vm1, %v2797_v48 }
 0xaab   : > { %v1860_v14 = vpop.f32.mrb[6].mxu0 }
 0xaac   : > { %v1188_v61 = vmul.f32 0.25, %v1860_v14  ;;  %v1178_v62 = vpop.f32.mrb[7].mxu0 }
 0xaad   : > { %v1187_v16 = vmul.f32 0.25, %v1178_v62  ;;  %v1853_v63 = vpop.f32.mrb[4].mxu1 }
 0xaae   : > { %v1059_v0 = vmul.f32 0.25, %v1853_v63  ;;  %v1049_v1 = vpop.f32.mrb[5].mxu1  ;;  %v1190_v2 = vadd.f32 %v1188_v61, %v2721_v33 }
 0xaaf   : > { %v1058_v3 = vmul.f32 0.25, %v1049_v1  ;;  %v1189_v6 = vadd.f32 %v1187_v16, %v2723_v35 }
 0xab0   : > { %v1194_v25 = vsel %vm459_vm1, %v1190_v2, -inf  ;;  %v1061_v13 = vadd.f32 %v1059_v0, %v2721_v33 }
 0xab1   : > { %1195 = vmax.xlane.f32.xlu0 %v1194_v25  ;;  %v1191_v7 = vsel %vm459_vm1, %v1189_v6, -inf  ;;  %v1060_v12 = vadd.f32 %v1058_v3, %v2723_v35 }
 0xab2   : > { %1192 = vmax.xlane.f32.xlu1 %v1191_v7  ;;  %v1065_v18 = vsel %vm459_vm1, %v1061_v13, -inf }
 0xab3   : > { %v1062_v15 = vsel %vm459_vm1, %v1060_v12, -inf }
 0xab5   : > { %1063 = vmax.xlane.f32.xlu0 %v1062_v15 }
 0xab6   : > { %1066 = vmax.xlane.f32.xlu1 %v1065_v18 }
 0xb3e   : > { %v1196_v19 = vpop.xlane.xlu0 %1195 }
 0xb3f   : > { %v1198_v20 = vsub.f32 %v1190_v2, %v1196_v19  ;;  %v1193_v21 = vpop.xlane.xlu1 %1192 }
 0xb40   : > { %v1197_v22 = vsub.f32 %v1189_v6, %v1193_v21 }
 0xb41   : > { %v1201_v17 = vmul.f32 1.442695, %v1198_v20 }
 0xb42   : > { %v1199_v23 = vmul.f32 1.442695, %v1197_v22  ;;  %v1064_v24 = vpop.xlane.xlu0 %1063 }
 0xb43   : > { %2106 = vpow2.f32 %v1201_v17  ;;  %v1068_v11 = vsub.f32 %v1060_v12, %v1064_v24  ;;  %v1067_v27 = vpop.xlane.xlu1 %1066 }
 0xb44   : > { %2108 = vpow2.f32 %v1199_v23  ;;  %v1069_v35 = vsub.f32 %v1061_v13, %v1067_v27 }
 0xb45   : > { %v1070_v33 = vmul.f32 1.442695, %v1068_v11 }
 0xb46   : > { %v1072_v28 = vmul.f32 1.442695, %v1069_v35 }
 0xb47   : > { %2110 = vpow2.f32 %v1070_v33  ;;  %v1375_v33 = vrot.slane %v2792_v45, %v864_v4 }
 0xb48   : > { %2112 = vpow2.f32 %v1072_v28  ;;  %v1365_v28 = vrot.slane %v2792_v45, %v854_v5  ;;  %v2363_v45 = vmov 0.0  }
 0xb49   : > { %1876 = vmatprep.mubr.msk.f32.mxu0 %vm2362_vm9, %v2363_v45 }
 0xb4d   : > { %v2107_v31 = vpop.eup %2106 }
 0xb4e   : > { %v2109_v32 = vpop.eup %2108  ;;  %v1204_v34 = vmul.f32 %v2107_v31, %v2714_v29 }
 0xb4f   : > { %v1203_v36 = vmul.f32 %v2109_v32, %v2717_v30 }
 0xb50   : > { %v1208_v37 = vsel %vm459_vm1, %v1204_v34, 0.0 }
 0xb51   : > { %v2111_v38 = vpop.eup %2110  ;;  %1209 = vadd.xlane.f32.xlu1 %v1208_v37  ;;  %v1205_v39 = vsel %vm459_vm1, %v1203_v36, 0.0 }
 0xb52   : > { %v2113_v40 = vpop.eup %2112  ;;  %1206 = vadd.xlane.f32.xlu0 %v1205_v39  ;;  %v1074_v41 = vmul.f32 %v2111_v38, %v2717_v30 }
 0xb53   : > { %v1075_v42 = vmul.f32 %v2113_v40, %v2714_v29 }
 0xb54   : > { %v1076_v43 = vsel %vm459_vm1, %v1074_v41, 0.0 }
 0xb55   : > { %v1079_v44 = vsel %vm459_vm1, %v1075_v42, 0.0 }
 0xb56   : > { %1080 = vadd.xlane.f32.xlu1 %v1079_v44  ;;  %1077 = vadd.xlane.f32.xlu0 %v1076_v43  ;;  %v2361_v44 = vmov 0.0|0.0  }
 0xb57   : > { %1954 = vmatprep.subr.bf16.mxu0 %v2361_v44 }
 0xb6c   : > { %2077 = vrot.lane.b32.xlu0 %v2807_v51, %s2358_s15 }
 0xbde   : > { %v1210_v46 = vpop.xlane.xlu1 %1209 }
 0xbdf   : > { %v1207_v47 = vpop.xlane.xlu0 %1206  ;;  %v1212_v49 = vmax.f32 %v1210_v46, 1e-30 }
 0xbe0   : > { %v1211_v10 = vmax.f32 %v1207_v47, 1e-30 }
 0xbe2   : > { %2114 = vrcp.f32 %v1211_v10  ;;  %v1467_v10 = vld [vmem:[#allocation10 + $0x8] sm:$0xff] }
 0xbe3   : > { %v1078_v52 = vpop.xlane.xlu0 %1077  ;;  %2116 = vrcp.f32 %v1212_v49  ;;  %v1081_v59 = vpop.xlane.xlu1 %1080  ;;  %v1466_v49 = vld [vmem:[#allocation10] sm:$0xff] }
 0xbe4   : > { %v1082_v58 = vmax.f32 %v1078_v52, 1e-30  ;;  %v1083_v60 = vmax.f32 %v1081_v59, 1e-30  ;;  %v1468_v52 = vld [vmem:[#allocation10 + $0x10] sm:$0xff] }
 0xbe6   : > { %2118 = vrcp.f32 %v1082_v58 }
 0xbe7   : > { %v2078_v53 = vpop.permute.xlu0 %2077  ;;  %2120 = vrcp.f32 %v1083_v60  ;;  %v1384_v60 = vld [vmem:[%s2660_s10] sm:$0x3] }
 0xbe8   : > { %v2080_v30 = vunpack.i.h.bf16 %v2078_v53  ;;  %v2079_v54 = vunpack.i.l.bf16 %v2078_v53 }
 0xbea   : > { %v1942_v29 = vpack.c.bf16 %v2080_v30, %v2079_v54  ;;  %v1958_v30 = vpack.c.bf16 %v1467_v10, %v1466_v49  ;;  %v1469_v54 = vld [vmem:[#allocation10 + $0x18] sm:$0xff] }
 0xbec   : > { %v2115_v55 = vpop.eup %2114  ;;  %1944 = vmatprep.subr.msk.bf16.mxu1 %vm2744_vm7, %v1942_v29 }
 0xbed   : > { %1947 = vmatpush3.bf16.msk.msra.mxu1 %vm2744_vm7, %v1942_v29  ;;  %v1215_v56 = vmul.f32 %v2115_v55, %v1203_v36  ;;  %v2117_v51 = vpop.eup %2116  ;;  %v1961_v55 = vpack.c.bf16 %v1469_v54, %v1468_v52 }
 0xbee   : > { %1950 = vmatprep.subr.msk.bf16.mxu1 %vm2748_vm8, %v1942_v29  ;;  %v1216_v57 = vmul.f32 %v2117_v51, %v1204_v34 }
 0xbef   : > { %1221 = vrot.lane.b32.xlu1 %v1215_v56, %s2359_s25 }
 0xbf0   : > { %v2119_v26 = vpop.eup %2118 }
 0xbf1   : > { %1953 = vmatpush3.bf16.msk.msra.mxu1 %vm2748_vm8, %v1942_v29  ;;  %v1086_v14 = vmul.f32 %v2119_v26, %v1074_v41  ;;  %v2121_v61 = vpop.eup %2120 }
 0xbf2   : > { %v1087_v63 = vmul.f32 %v2121_v61, %v1075_v42  ;;  %1957 = vmatprep.subr.bf16.mxu1 %v2361_v44 }
 0xbf3   : > { %1223 = vrot.lane.b32.xlu1 %v1216_v57, %s2359_s25 }
 0xc61   : > { %v1222_v62 = vpop.permute.xlu1 %1221 }
 0xc62   : > { %v1227_v16 = vsel %vm459_vm1, %v1086_v14, %v1222_v62 }
 0xc63   : > { %1869 = vmatprep.mubr.msk.f32.mxu1 %vm371_vm0, %v1227_v16 }
 0xc65   : > { %v1224_v0 = vpop.permute.xlu1 %1223 }
 0xc66   : > { %v1228_v8 = vsel %vm459_vm1, %v1087_v63, %v1224_v0 }
 0xc67   : > { %1870 = vmatmul.mubr.msk.f32.vlgmr.msra.gmra.mrb[6].mxu1 %vm371_vm0, %v1228_v8 }
 0xc68   : > { %1887 = vmatprep.mubr.msk.f32.mxu1 %vm2362_vm9, %v2363_v45  ;;  %1959 = vmatpush3.bf16.msra.mxu1 %v1958_v30 }
 0xc69   : > { %1960 = vmatprep.subr.bf16.mxu1 %v2361_v44 }
 0xc6c   : > { %1962 = vmatpush3.bf16.msra.mxu1 %v1961_v55 }
 0xd3a   : > { %v1871_v1 = vpop.f32.mrb[6].mxu1 }
 0xd3b   : > { %1314 = vrot.lane.b32.xlu1 %v1871_v1, %s2357_s13  ;;  %v1301_v2 = vpop.f32.mrb[7].mxu1 }
 0xd3c   : > { %1312 = vrot.lane.b32.xlu0 %v1301_v2, %s2357_s13 }
 0xdad   : > { %v1315_v3 = vpop.permute.xlu1 %1314 }
 0xdae   : > { %v1319_v6 = vadd.f32 %v1315_v3, %v2797_v48  ;;  %v1313_v25 = vpop.permute.xlu0 %1312 }
 0xdaf   : > { %v1318_v7 = vadd.f32 %v1313_v25, %v2799_v50 }
 0xdb0   : > { %1324 = vrot.lane.b32.xlu1 %v1319_v6, %s2360_s26 }
 0xdb1   : > { %1322 = vrot.lane.b32.xlu0 %v1318_v7, %s2360_s26 }
 0xe22   : > { %v1325_v12 = vpop.permute.xlu1 %1324 }
 0xe23   : > { %v1323_v13 = vpop.permute.xlu0 %1322  ;;  %v1331_v15 = vsel %vm371_vm0, %v1325_v12, 0.0 }
 0xe24   : > { %1332 = vadd.xlane.f32.xlu1 %v1331_v15  ;;  %v1328_v18 = vsel %vm371_vm0, %v1323_v13, 0.0 }
 0xe25   : > { %1329 = vadd.xlane.f32.xlu0 %v1328_v18 }
 0xeb1   : > { %v1333_v19 = vpop.xlane.xlu1 %1332 }
 0xeb2   : > { %v1335_v20 = vmul.f32 0.03125, %v1333_v19  ;;  %v1330_v21 = vpop.xlane.xlu0 %1329 }
 0xeb3   : > { %v1334_v22 = vmul.f32 0.03125, %v1330_v21 }
 0xeb4   : > { %v1337_v48 = vsub.f32 %v1319_v6, %v1335_v20 }
 0xeb5   : > { %v1336_v17 = vsub.f32 %v1318_v7, %v1334_v22 }
 0xeb6   : > { %v1339_v23 = vmul.f32 %v1337_v48, %v1337_v48 }
 0xeb7   : > { %v1338_v50 = vmul.f32 %v1336_v17, %v1336_v17 }
 0xeb8   : > { %1344 = vrot.lane.b32.xlu1 %v1339_v23, %s2360_s26 }
 0xeb9   : > { %1342 = vrot.lane.b32.xlu0 %v1338_v50, %s2360_s26 }
 0xf2a   : > { %v1345_v24 = vpop.permute.xlu1 %1344 }
 0xf2b   : > { %v1343_v11 = vpop.permute.xlu0 %1342  ;;  %v1351_v27 = vsel %vm371_vm0, %v1345_v24, 0.0 }
 0xf2c   : > { %1352 = vadd.xlane.f32.xlu1 %v1351_v27  ;;  %v1348_v35 = vsel %vm371_vm0, %v1343_v11, 0.0 }
 0xf2d   : > { %1349 = vadd.xlane.f32.xlu0 %v1348_v35 }
 0xf3d   : > { %1377 = vrot.lane.b32.xlu1 %v1375_v33, %s2357_s13 }
 0xf43   : > { %1367 = vrot.lane.b32.xlu0 %v1365_v28, %s2357_s13 }
 0xfb9   : > { %v1353_v31 = vpop.xlane.xlu1 %1352 }
 0xfba   : > { %v1355_v32 = vmul.f32 0.03125, %v1353_v31  ;;  %v1350_v34 = vpop.xlane.xlu0 %1349 }
 0xfbb   : > { %v1354_v36 = vmul.f32 0.03125, %v1350_v34 }
 0xfbc   : > { %v1357_v37 = vadd.f32 1e-05, %v1355_v32 }
 0xfbd   : > { %v1356_v38 = vadd.f32 1e-05, %v1354_v36  ;;  %v1378_v43 = vpop.permute.xlu1 %1377 }
 0xfbe   : > { %2122 = vrsqrt.f32 %v1357_v37  ;;  %v1368_v40 = vpop.permute.xlu0 %1367 }
 0xfbf   : > { %2124 = vrsqrt.f32 %v1356_v38 }
 0xfc8   : > { %v2123_v39 = vpop.eup %2122 }
 0xfc9   : > { %v2125_v41 = vpop.eup %2124  ;;  %v1361_v4 = vmul.f32 %v2123_v39, %v1337_v48 }
 0xfca   : > { %v1360_v42 = vmul.f32 %v2125_v41, %v1336_v17 }
 0xfcb   : > { %v1371_v9 = vmul.f32 %v1368_v40, %v1361_v4 }
 0xfcc   : > { %v1370_v5 = vmul.f32 %v1368_v40, %v1360_v42 }
 0xfcd   : > { %v1381_v46 = vadd.f32 %v1378_v43, %v1371_v9 }
 0xfce   : > { %v1380_v47 = vadd.f32 %v1378_v43, %v1370_v5 }
 0xfcf   : > { %v1383_v53 = vmax.f32 %v1381_v46, 0.0 }
 0xfd0   : > { %v1382_v29 = vmax.f32 %v1380_v47, 0.0 }
 0xfd2   : > { %v2081_v56 = vpack.i.bf16 %v1383_v53, %v1382_v29 }
 0xfd4   : > { %2082 = vrot.lane.b32.xlu0 %v2081_v56, %s2360_s26 }
0x1046   : > { %v2083_v51 = vpop.permute.xlu0 %2082 }
0x1047   : > { %v2085_v57 = vunpack.i.h.bf16 %v2083_v51  ;;  %v2084_v58 = vunpack.i.l.bf16 %v2083_v51 }
0x1049   : > { %v1955_v59 = vpack.c.bf16 %v2085_v57, %v2084_v58 }
0x104b   : > { %1956 = vmatpush3.bf16.msra.mxu0 %v1955_v59 }
0x104e   : > { %1877 = vmatmul.mubr.msk.f32.vlgmr.msra.gmra.mrb[8].mxu0 %vm459_vm1, %v1384_v60 }
0x1121   : > { %v1462_v26 = vpop.f32.mrb[8].mxu0 }
0x1122   : > { %v1878_v14 = vpop.f32.mrb[9].mxu0  ;;  %1888 = vmatmul.mubr.msk.f32.vlgmr.msra.gmra.mrb[8].mxu1 %vm371_vm0, %v1462_v26 }
0x11f5   : > { %v1539_v61 = vpop.f32.mrb[8].mxu1 }
0x11f6   : > { %1543 = vst [vmem:[%s345_s12] sm:$0x3] %v1539_v61  ;;  %v1889_v62 = vpop.f32.mrb[9].mxu1 }
0x11f7   : > { %2285 = shalt.err (!%p2282_p1)
}
0x11f8   : > { %s2286_s8 = scalar_lea.hbm %s2891_s20, 32  ;;  %s2290_s10 = scalar_lea.hbm %s2937_s5, 256 }
0x11f9   : > { %p2287_p5 = scmp.ne.s32.totalorder %s2891_s20, %s2286_s8  ;;  %p2291_p12 = scmp.lt.u32.totalorder %s2891_s20, %s2937_s5 }
0x11fa   : > { %p2292_p7 = scmp.lt.u32.totalorder %s2290_s10, %s2286_s8  ;;  %p2294_p3 = scmp.lt.u32.totalorder %s2286_s8, %s2891_s20 }
0x11fb   : > { %p2288_p11 = pnand %p2287_p5, %p2989_p8 }
0x11fc   : > { %p2293_p13 = por %p2292_p7, %p2291_p12 }
0x11fd   : > { %p2289_p4 = pneg %p2288_p11 }
0x11fe   : > { %p2295_p0 = por %p2294_p3, %p2293_p13 }
0x1200   : > { %p2296_p6 = pnand %p2295_p0, %p2289_p4 }
0x1202   : > { %2299 = shalt.err (!%p2296_p6)
}
0x1203   : > { %1977 = dma.vmem_to_hbm [thread:$0]  (%p2989_p8), %s2886_s11, 32, %s2891_s20, %s1545_s28  }
0x1204 PF: > { %p2005_p2 = scmp.ge.s32.totalorder %s2346_s21, 2  ;;  %s1570_s13 = sand.u32 1, %s2334_s18  }
0x1205   : > { %p2990_p9 = scmp.ne.s32.totalorder %s2960_s6, 0  ;;  %s1571_s15 = scalar_lea.sflag [#allocation4], %s1570_s13 }
0x1207   : > { %p1997_p10 = pnand %p2005_p2, %p2990_p9 }
0x1209   : > { %2329 = dma.done.wait (!%p1997_p10), %s1571_s15, 32  }
0x120a   : > { %2331 = vsyncadd (!%p1997_p10), %s1571_s15, 4294967264  ;;  %s2991_s25 = sld [smem:[#allocation16_spill]]  ;;  %s2992_s20 = sld [smem:[#allocation17_spill]] }
0x120b   : > { %p22_p1 = scmp.ge.s32.totalorder %s2420_s24, 10   ;;  %s2993_s18 = smov %s2338_s19 }
0x120c   : > { %s2995_s21 = smov %s2420_s24 }
0x120d   :  { %24 = sbr.rel (!%p22_p1) target bundleno = 11 (0xb), region = 118 }
0x1210   : > { %s2994_s19 = smov %s2991_s25 }
0x1214   :  { %1576 = vsyncpa [#allocation3], 1 }
0x1215   :  { %1578 = vsyncpa [#allocation3 + $0x1], 1 }
0x1216   :  { %1579 = vsyncpa [#allocation6], 1 }
0x1217   :  { %1581 = vsyncpa [#allocation6 + $0x1], 1 }
0x1218   :  { %1582 = vsyncpa [#allocation9], 1 }
0x1219   :  { %1583 = vsyncpa [#allocation4], 1 }
0x121a   :  { %1585 = vsyncpa [#allocation4 + $0x1], 1 }

</bundles_post_ra>
